<compile_context>
chip_gen: v7x
topology: tpu7x:2x2x1
jax: 0.10.0
libtpu: 0.0.40
codegen_flags: <defaults>
</compile_context>

<pallas_src>
import numpy as np
import jax
import jax.numpy as jnp
from jax import lax
from jax.experimental import pallas as pl
from jax.experimental.pallas import tpu as pltpu

INPUT_DIM = 100683     # vocab size (module default)
EMBED_DIM = 4
HIDDEN = 8
NUM_CLASSES = 2


def _tree_sum(terms):
    """Pairwise (log-depth) sum of a Python list of same-shaped arrays."""
    while len(terms) > 1:
        nxt = [terms[i] + terms[i + 1] for i in range(0, len(terms) - 1, 2)]
        if len(terms) % 2:
            nxt.append(terms[-1])
        terms = nxt
    return terms[0]


def _lstm_fc_kernel(gx_ref, w_hh_t_ref, w_fc_t_ref, b_fc_ref, out_ref,
                    h_ref, c_ref):
    """Grid = (batch_blocks, time_chunks)  [batch parallel, time arbitrary].

    gx_ref:   (CH, BB, 4H) precomputed input pre-activations (bias folded in,
              gate order [i, f, o, g], g-columns pre-scaled by 2)
    w_hh_t:   (H, 4H)      recurrent weights, same permuted/scaled gate order
    w_fc_t:   (H, C)       final Linear weights (transposed)
    b_fc:     (1, C)
    out:      (BB, C)
    h_ref/c_ref: (BB, H) VMEM scratch carrying the LSTM state across time chunks
    """
    tci = pl.program_id(1)
    n_tc = pl.num_programs(1)
    CH, BB, G = gx_ref.shape
    H = w_hh_t_ref.shape[0]

    @pl.when(tci == 0)
    def _():
        h_ref[...] = jnp.zeros_like(h_ref)
        c_ref[...] = jnp.zeros_like(c_ref)

    # Hoist the constant (1,4H)->(BB,4H) broadcasts of the recurrent weight rows
    # out of the time loop (JAX does not CSE broadcast_in_dim inside the loop).
    w_hh = w_hh_t_ref[...]                                    # (H, 4H)
    w_rows = [jnp.broadcast_to(w_hh[k:k + 1, :], (BB, G)) for k in range(H)]

    def step(t, carry):
        h, c = carry
        gates_x = gx_ref[t]                                   # (BB, 4H)
        # Recurrent contribution: 8 independent VPU products, tree-added
        # (depth 3) -> short critical path, no MXU latency on the serial chain.
        prods = [h[:, k:k + 1] * w_rows[k] for k in range(H)]
        gates = gates_x + _tree_sum(prods)
        # Single EUP launch for all four gates (g pre-activations were scaled
        # by 2 in the wrapper; tanh(x) = 2*sigmoid(2x) - 1).
        sig = jax.nn.sigmoid(gates)                           # (BB, 4H)
        i = sig[:, 0 * H:1 * H]
        f = sig[:, 1 * H:2 * H]
        o = sig[:, 2 * H:3 * H]
        g = 2.0 * sig[:, 3 * H:4 * H] - 1.0
        c_new = f * c + i * g
        h_new = o * jnp.tanh(c_new)
        return (h_new, c_new)

    # Bounded unroll: full unroll only for short chunks (code-size / vreg safety).
    unroll = True if CH <= 16 else 8
    h_last, c_last = lax.fori_loop(0, CH, step, (h_ref[...], c_ref[...]),
                                   unroll=unroll)
    h_ref[...] = h_last
    c_ref[...] = c_last

    @pl.when(tci == n_tc - 1)
    def _():
        # Final fc on the VPU: (BB,8) x (8,2) is 32 MACs -- broadcast-FMAs are
        # cheaper than an MXU push + result-FIFO pop on the tail latency.
        w_fc = w_fc_t_ref[...]                                # (H, C)
        C = w_fc.shape[1]
        acc = jnp.broadcast_to(b_fc_ref[...], (BB, C))
        prods = [h_last[:, k:k + 1] * jnp.broadcast_to(w_fc[k:k + 1, :], (BB, C))
                 for k in range(H)]
        out_ref[...] = acc + _tree_sum(prods)


def lstm_fc_pallas(gx_tbg, w_hh_t, w_fc_t, b_fc2, *, time_chunk=256):
    """gx_tbg: (T, B, 4H) f32 pre-activations; w_hh_t: (H, 4H); w_fc_t: (H, C);
    b_fc2: (1, C).  Streams gx in time chunks, carries (h, c) in VMEM scratch."""
    T, B, G = gx_tbg.shape
    H = w_hh_t.shape[0]
    C = w_fc_t.shape[1]

    ch = min(T, time_chunk)
    pad = (-T) % ch
    if pad:
        # Front-pad with "identity" pre-activations: sigmoid(-30) ~ 0 for the
        # i/f/o gates keeps (h, c) exactly at the zero initial state through the
        # padded steps, so the true last step stays the last step.
        pad_block = jnp.full((pad, B, G), -30.0, jnp.float32)
        pad_block = pad_block.at[:, :, 3 * H:].set(0.0)
        gx_tbg = jnp.concatenate([pad_block, gx_tbg], axis=0)
        T = T + pad
    n_tc = T // ch

    # Batch-block axis (megacore "parallel"); keep the whole batch in one block
    # unless it tiles cleanly by 128.
    bb = 128 if (B % 128 == 0) else B
    n_bb = B // bb

    grid = (n_bb, n_tc)
    return pl.pallas_call(
        _lstm_fc_kernel,
        out_shape=jax.ShapeDtypeStruct((B, C), jnp.float32),
        grid_spec=pltpu.PrefetchScalarGridSpec(
            num_scalar_prefetch=0,
            grid=grid,
            in_specs=[
                pl.BlockSpec((ch, bb, G), lambda b, t: (t, b, 0)),   # streamed gx
                pl.BlockSpec((H, G), lambda b, t: (0, 0)),           # w_hh_t
                pl.BlockSpec((H, C), lambda b, t: (0, 0)),           # w_fc_t
                pl.BlockSpec((1, C), lambda b, t: (0, 0)),           # b_fc
            ],
            out_specs=pl.BlockSpec((bb, C), lambda b, t: (b, 0)),
            scratch_shapes=[pltpu.VMEM((bb, H), jnp.float32),        # h carry
                            pltpu.VMEM((bb, H), jnp.float32)],       # c carry
        ),
        compiler_params=pltpu.CompilerParams(
            dimension_semantics=("parallel", "arbitrary")),
    )(gx_tbg, w_hh_t, w_fc_t, b_fc2)


def prepare_kernel_params(params):
    """One-time derivation of kernel-friendly parameters from PyTorch-style params."""
    H = HIDDEN
    # Permutation of the 4H gate axis: PyTorch [i, f, g, o] -> kernel [i, f, o, g]
    perm = np.concatenate([np.arange(0, H), np.arange(H, 2 * H),
                           np.arange(3 * H, 4 * H), np.arange(2 * H, 3 * H)])
    w_ih_p = params["w_ih"][perm]                                  # (4H, E)
    w_hh_p = params["w_hh"][perm]                                  # (4H, H)
    b_p = (params["b_ih"] + params["b_hh"])[perm]                  # (4H,)

    # tanh(x) = 2*sigmoid(2x) - 1 -> pre-scale the g-gate pre-activations by 2.
    scale = jnp.ones((4 * H,), jnp.float32).at[3 * H:].set(2.0)

    # Fold the input projection + bias into the embedding table once: (V, 4H).
    emb_proj = ((params["embedding"].astype(jnp.float32) @ w_ih_p.T + b_p)
                * scale[None, :]).astype(jnp.float32)

    return {
        "emb_proj": emb_proj,                                          # (V, 4H)
        "w_hh_t": (w_hh_p.T * scale[None, :]).astype(jnp.float32),     # (H, 4H)
        "w_fc_t": jnp.asarray(params["w_fc"].T, jnp.float32),          # (H, C)
        "b_fc2": jnp.asarray(params["b_fc"][None, :], jnp.float32),    # (1, C)
    }


def model_forward(text, kparams):
    """text: (B, T) int32 token ids. Returns (B, num_classes) float32."""
    # glue: data-dependent gather over the (V, 4H) projected table stays in JAX.
    # Gather time-major directly (text.T): (T, B, 4H), bias + projection folded.
    gx_tbg = jnp.take(kparams["emb_proj"], text.T, axis=0)
    return lstm_fc_pallas(gx_tbg, kparams["w_hh_t"], kparams["w_fc_t"],
                          kparams["b_fc2"])


def init_params(key):
    ks = jax.random.split(key, 7)
    H, E, C = HIDDEN, EMBED_DIM, NUM_CLASSES
    s = 1.0 / np.sqrt(H)
    return {
        "embedding": jax.random.normal(ks[0], (INPUT_DIM, E), jnp.float32),
        "w_ih": jax.random.uniform(ks[1], (4 * H, E), jnp.float32, -s, s),
        "w_hh": jax.random.uniform(ks[2], (4 * H, H), jnp.float32, -s, s),
        "b_ih": jax.random.uniform(ks[3], (4 * H,), jnp.float32, -s, s),
        "b_hh": jax.random.uniform(ks[4], (4 * H,), jnp.float32, -s, s),
        "w_fc": jax.random.uniform(ks[5], (C, H), jnp.float32, -s, s),
        "b_fc": jax.random.uniform(ks[6], (C,), jnp.float32, -s, s),
    }


def _reference_forward(text, p):
    """Pure-JAX reference mirroring PyTorch LSTM semantics (gate order i,f,g,o)."""
    emb = jnp.take(p["embedding"], text, axis=0)  # (B, T, E)
    B, T, _ = emb.shape
    H = HIDDEN
    h = jnp.zeros((B, H), jnp.float32)
    c = jnp.zeros((B, H), jnp.float32)
    for t in range(T):
        g = emb[:, t, :] @ p["w_ih"].T + h @ p["w_hh"].T + p["b_ih"] + p["b_hh"]
        i = jax.nn.sigmoid(g[:, 0 * H:1 * H])
        f = jax.nn.sigmoid(g[:, 1 * H:2 * H])
        gg = jnp.tanh(g[:, 2 * H:3 * H])
        o = jax.nn.sigmoid(g[:, 3 * H:4 * H])
        c = f * c + i * gg
        h = o * jnp.tanh(c)
    return h @ p["w_fc"].T + p["b_fc"]


if __name__ == "__main__":
    key = jax.random.PRNGKey(0)
    pkey, dkey = jax.random.split(key)
    params = init_params(pkey)
    kparams = prepare_kernel_params(params)   # one-time fold / permute / scale

    B, T = 2, 8
    text = jax.random.randint(dkey, (B, T), 0, INPUT_DIM, dtype=jnp.int32)

    out = model_forward(text, kparams)
    out = jax.block_until_ready(out)

    ref = _reference_forward(text, params)
    assert out.shape == (B, NUM_CLASSES)
    assert np.allclose(np.asarray(out), np.asarray(ref), rtol=1e-4, atol=1e-5), (
        np.max(np.abs(np.asarray(out) - np.asarray(ref))))

    print("KERNEL_OK")
</pallas_src>

<mosaic_0001>
module attributes {stable_mosaic.version = 11 : i64} {
  func.func @_lstm_fc_kernel(%arg0: i32, %arg1: i32, %arg2: memref<8x2x32xf32, #tpu.memory_space<vmem>>, %arg3: memref<8x32xf32, #tpu.memory_space<vmem>>, %arg4: memref<8x2xf32, #tpu.memory_space<vmem>>, %arg5: memref<1x2xf32, #tpu.memory_space<vmem>>, %arg6: memref<2x2xf32, #tpu.memory_space<vmem>>, %arg7: memref<2x8xf32, #tpu.memory_space<vmem>>, %arg8: memref<2x8xf32, #tpu.memory_space<vmem>>) attributes {dimension_semantics = [#tpu.dimension_semantics<parallel>, #tpu.dimension_semantics<arbitrary>], iteration_bounds = array<i64: 1, 1>, scalar_prefetch = 0 : i64, scratch_operands = 2 : i64, tpu.core_type = #tpu.core_type<tc>, window_params = [{transform_indices = @transform_0, window_bounds = array<i64: 8, 2, 32>}, {pipeline_mode = #tpu.pipeline_mode<synchronous>, transform_indices = @transform_1, window_bounds = array<i64: 8, 32>}, {pipeline_mode = #tpu.pipeline_mode<synchronous>, transform_indices = @transform_2, window_bounds = array<i64: 8, 2>}, {pipeline_mode = #tpu.pipeline_mode<synchronous>, transform_indices = @transform_3, window_bounds = array<i64: 1, 2>}, {transform_indices = @transform_4, window_bounds = array<i64: 2, 2>}]} {
    %c0_i32 = arith.constant 0 : i32
    %0 = arith.cmpi eq, %arg1, %c0_i32 : i32
    %1 = arith.extui %0 : i1 to i32
    %c0_i32_0 = arith.constant 0 : i32
    %2 = arith.cmpi ne, %1, %c0_i32_0 : i32
    scf.if %2 {
      %cst_52 = arith.constant 0.000000e+00 : f32
      %459 = vector.broadcast %cst_52 : f32 to vector<2x8xf32>
      %c0_53 = arith.constant 0 : index
      %c0_54 = arith.constant 0 : index
      %460 = vector.load %arg7[%c0_53, %c0_54] : memref<2x8xf32, #tpu.memory_space<vmem>>, vector<2x8xf32>
      tpu.vector_store %arg7[%c0_53, %c0_54], %459 {strides = array<i32>} : memref<2x8xf32, #tpu.memory_space<vmem>>, vector<2x8xf32>,
      %cst_55 = arith.constant 0.000000e+00 : f32
      %461 = vector.broadcast %cst_55 : f32 to vector<2x8xf32>
      %c0_56 = arith.constant 0 : index
      %c0_57 = arith.constant 0 : index
      %462 = vector.load %arg8[%c0_56, %c0_57] : memref<2x8xf32, #tpu.memory_space<vmem>>, vector<2x8xf32>
      tpu.vector_store %arg8[%c0_56, %c0_57], %461 {strides = array<i32>} : memref<2x8xf32, #tpu.memory_space<vmem>>, vector<2x8xf32>,
    } else {
    }
    %c0 = arith.constant 0 : index
    %c0_1 = arith.constant 0 : index
    %3 = vector.load %arg3[%c0, %c0_1] : memref<8x32xf32, #tpu.memory_space<vmem>>, vector<8x32xf32>
    %4 = vector.extract_strided_slice %3 {offsets = [0, 0], sizes = [1, 32], strides = [1, 1]} : vector<8x32xf32> to vector<1x32xf32>
    %5 = vector.shape_cast %4 : vector<1x32xf32> to vector<1x32xf32>
    %6 = vector.broadcast %5 : vector<1x32xf32> to vector<2x32xf32>
    %7 = vector.extract_strided_slice %3 {offsets = [1, 0], sizes = [1, 32], strides = [1, 1]} : vector<8x32xf32> to vector<1x32xf32>
    %8 = vector.shape_cast %7 : vector<1x32xf32> to vector<1x32xf32>
    %9 = vector.broadcast %8 : vector<1x32xf32> to vector<2x32xf32>
    %10 = vector.extract_strided_slice %3 {offsets = [2, 0], sizes = [1, 32], strides = [1, 1]} : vector<8x32xf32> to vector<1x32xf32>
    %11 = vector.shape_cast %10 : vector<1x32xf32> to vector<1x32xf32>
    %12 = vector.broadcast %11 : vector<1x32xf32> to vector<2x32xf32>
    %13 = vector.extract_strided_slice %3 {offsets = [3, 0], sizes = [1, 32], strides = [1, 1]} : vector<8x32xf32> to vector<1x32xf32>
    %14 = vector.shape_cast %13 : vector<1x32xf32> to vector<1x32xf32>
    %15 = vector.broadcast %14 : vector<1x32xf32> to vector<2x32xf32>
    %16 = vector.extract_strided_slice %3 {offsets = [4, 0], sizes = [1, 32], strides = [1, 1]} : vector<8x32xf32> to vector<1x32xf32>
    %17 = vector.shape_cast %16 : vector<1x32xf32> to vector<1x32xf32>
    %18 = vector.broadcast %17 : vector<1x32xf32> to vector<2x32xf32>
    %19 = vector.extract_strided_slice %3 {offsets = [5, 0], sizes = [1, 32], strides = [1, 1]} : vector<8x32xf32> to vector<1x32xf32>
    %20 = vector.shape_cast %19 : vector<1x32xf32> to vector<1x32xf32>
    %21 = vector.broadcast %20 : vector<1x32xf32> to vector<2x32xf32>
    %22 = vector.extract_strided_slice %3 {offsets = [6, 0], sizes = [1, 32], strides = [1, 1]} : vector<8x32xf32> to vector<1x32xf32>
    %23 = vector.shape_cast %22 : vector<1x32xf32> to vector<1x32xf32>
    %24 = vector.broadcast %23 : vector<1x32xf32> to vector<2x32xf32>
    %25 = vector.extract_strided_slice %3 {offsets = [7, 0], sizes = [1, 32], strides = [1, 1]} : vector<8x32xf32> to vector<1x32xf32>
    %26 = vector.shape_cast %25 : vector<1x32xf32> to vector<1x32xf32>
    %27 = vector.broadcast %26 : vector<1x32xf32> to vector<2x32xf32>
    %c0_2 = arith.constant 0 : index
    %c0_3 = arith.constant 0 : index
    %28 = vector.load %arg7[%c0_2, %c0_3] : memref<2x8xf32, #tpu.memory_space<vmem>>, vector<2x8xf32>
    %c0_4 = arith.constant 0 : index
    %c0_5 = arith.constant 0 : index
    %29 = vector.load %arg8[%c0_4, %c0_5] : memref<2x8xf32, #tpu.memory_space<vmem>>, vector<2x8xf32>
    %c0_i32_6 = arith.constant 0 : i32
    %30 = arith.index_cast %c0_i32_6 : i32 to index
    %c0_7 = arith.constant 0 : index
    %c0_8 = arith.constant 0 : index
    %31 = vector.load %arg2[%30, %c0_7, %c0_8] : memref<8x2x32xf32, #tpu.memory_space<vmem>>, vector<1x2x32xf32>
    %32 = vector.shape_cast %31 : vector<1x2x32xf32> to vector<2x32xf32>
    %33 = vector.extract_strided_slice %28 {offsets = [0, 0], sizes = [2, 1], strides = [1, 1]} : vector<2x8xf32> to vector<2x1xf32>
    %34 = vector.broadcast %33 : vector<2x1xf32> to vector<2x32xf32>
    %35 = arith.mulf %34, %6 : vector<2x32xf32>
    %36 = vector.extract_strided_slice %28 {offsets = [0, 1], sizes = [2, 1], strides = [1, 1]} : vector<2x8xf32> to vector<2x1xf32>
    %37 = vector.broadcast %36 : vector<2x1xf32> to vector<2x32xf32>
    %38 = arith.mulf %37, %9 : vector<2x32xf32>
    %39 = vector.extract_strided_slice %28 {offsets = [0, 2], sizes = [2, 1], strides = [1, 1]} : vector<2x8xf32> to vector<2x1xf32>
    %40 = vector.broadcast %39 : vector<2x1xf32> to vector<2x32xf32>
    %41 = arith.mulf %40, %12 : vector<2x32xf32>
    %42 = vector.extract_strided_slice %28 {offsets = [0, 3], sizes = [2, 1], strides = [1, 1]} : vector<2x8xf32> to vector<2x1xf32>
    %43 = vector.broadcast %42 : vector<2x1xf32> to vector<2x32xf32>
    %44 = arith.mulf %43, %15 : vector<2x32xf32>
    %45 = vector.extract_strided_slice %28 {offsets = [0, 4], sizes = [2, 1], strides = [1, 1]} : vector<2x8xf32> to vector<2x1xf32>
    %46 = vector.broadcast %45 : vector<2x1xf32> to vector<2x32xf32>
    %47 = arith.mulf %46, %18 : vector<2x32xf32>
    %48 = vector.extract_strided_slice %28 {offsets = [0, 5], sizes = [2, 1], strides = [1, 1]} : vector<2x8xf32> to vector<2x1xf32>
    %49 = vector.broadcast %48 : vector<2x1xf32> to vector<2x32xf32>
    %50 = arith.mulf %49, %21 : vector<2x32xf32>
    %51 = vector.extract_strided_slice %28 {offsets = [0, 6], sizes = [2, 1], strides = [1, 1]} : vector<2x8xf32> to vector<2x1xf32>
    %52 = vector.broadcast %51 : vector<2x1xf32> to vector<2x32xf32>
    %53 = arith.mulf %52, %24 : vector<2x32xf32>
    %54 = vector.extract_strided_slice %28 {offsets = [0, 7], sizes = [2, 1], strides = [1, 1]} : vector<2x8xf32> to vector<2x1xf32>
    %55 = vector.broadcast %54 : vector<2x1xf32> to vector<2x32xf32>
    %56 = arith.mulf %55, %27 : vector<2x32xf32>
    %57 = arith.addf %35, %38 : vector<2x32xf32>
    %58 = arith.addf %41, %44 : vector<2x32xf32>
    %59 = arith.addf %47, %50 : vector<2x32xf32>
    %60 = arith.addf %53, %56 : vector<2x32xf32>
    %61 = arith.addf %57, %58 : vector<2x32xf32>
    %62 = arith.addf %59, %60 : vector<2x32xf32>
    %63 = arith.addf %61, %62 : vector<2x32xf32>
    %64 = arith.addf %32, %63 : vector<2x32xf32>
    %65 = arith.negf %64 : vector<2x32xf32>
    %66 = math.exp %65 : vector<2x32xf32>
    %cst = arith.constant 1.000000e+00 : f32
    %67 = vector.broadcast %cst : f32 to vector<2x32xf32>
    %68 = arith.addf %67, %66 : vector<2x32xf32>
    %69 = arith.divf %67, %68 : vector<2x32xf32>
    %70 = vector.extract_strided_slice %69 {offsets = [0, 0], sizes = [2, 8], strides = [1, 1]} : vector<2x32xf32> to vector<2x8xf32>
    %71 = vector.extract_strided_slice %69 {offsets = [0, 8], sizes = [2, 8], strides = [1, 1]} : vector<2x32xf32> to vector<2x8xf32>
    %72 = vector.extract_strided_slice %69 {offsets = [0, 16], sizes = [2, 8], strides = [1, 1]} : vector<2x32xf32> to vector<2x8xf32>
    %73 = vector.extract_strided_slice %69 {offsets = [0, 24], sizes = [2, 8], strides = [1, 1]} : vector<2x32xf32> to vector<2x8xf32>
    %cst_9 = arith.constant 2.000000e+00 : f32
    %74 = vector.broadcast %cst_9 : f32 to vector<2x8xf32>
    %75 = arith.mulf %74, %73 : vector<2x8xf32>
    %cst_10 = arith.constant 1.000000e+00 : f32
    %76 = vector.broadcast %cst_10 : f32 to vector<2x8xf32>
    %77 = arith.subf %75, %76 : vector<2x8xf32>
    %78 = arith.mulf %71, %29 : vector<2x8xf32>
    %79 = arith.mulf %70, %77 : vector<2x8xf32>
    %80 = arith.addf %78, %79 : vector<2x8xf32>
    %81 = math.tanh %80 : vector<2x8xf32>
    %82 = arith.mulf %72, %81 : vector<2x8xf32>
    %c1_i32 = arith.constant 1 : i32
    %83 = arith.index_cast %c1_i32 : i32 to index
    %c0_11 = arith.constant 0 : index
    %c0_12 = arith.constant 0 : index
    %84 = vector.load %arg2[%83, %c0_11, %c0_12] : memref<8x2x32xf32, #tpu.memory_space<vmem>>, vector<1x2x32xf32>
    %85 = vector.shape_cast %84 : vector<1x2x32xf32> to vector<2x32xf32>
    %86 = vector.extract_strided_slice %82 {offsets = [0, 0], sizes = [2, 1], strides = [1, 1]} : vector<2x8xf32> to vector<2x1xf32>
    %87 = vector.broadcast %86 : vector<2x1xf32> to vector<2x32xf32>
    %88 = arith.mulf %87, %6 : vector<2x32xf32>
    %89 = vector.extract_strided_slice %82 {offsets = [0, 1], sizes = [2, 1], strides = [1, 1]} : vector<2x8xf32> to vector<2x1xf32>
    %90 = vector.broadcast %89 : vector<2x1xf32> to vector<2x32xf32>
    %91 = arith.mulf %90, %9 : vector<2x32xf32>
    %92 = vector.extract_strided_slice %82 {offsets = [0, 2], sizes = [2, 1], strides = [1, 1]} : vector<2x8xf32> to vector<2x1xf32>
    %93 = vector.broadcast %92 : vector<2x1xf32> to vector<2x32xf32>
    %94 = arith.mulf %93, %12 : vector<2x32xf32>
    %95 = vector.extract_strided_slice %82 {offsets = [0, 3], sizes = [2, 1], strides = [1, 1]} : vector<2x8xf32> to vector<2x1xf32>
    %96 = vector.broadcast %95 : vector<2x1xf32> to vector<2x32xf32>
    %97 = arith.mulf %96, %15 : vector<2x32xf32>
    %98 = vector.extract_strided_slice %82 {offsets = [0, 4], sizes = [2, 1], strides = [1, 1]} : vector<2x8xf32> to vector<2x1xf32>
    %99 = vector.broadcast %98 : vector<2x1xf32> to vector<2x32xf32>
    %100 = arith.mulf %99, %18 : vector<2x32xf32>
    %101 = vector.extract_strided_slice %82 {offsets = [0, 5], sizes = [2, 1], strides = [1, 1]} : vector<2x8xf32> to vector<2x1xf32>
    %102 = vector.broadcast %101 : vector<2x1xf32> to vector<2x32xf32>
    %103 = arith.mulf %102, %21 : vector<2x32xf32>
    %104 = vector.extract_strided_slice %82 {offsets = [0, 6], sizes = [2, 1], strides = [1, 1]} : vector<2x8xf32> to vector<2x1xf32>
    %105 = vector.broadcast %104 : vector<2x1xf32> to vector<2x32xf32>
    %106 = arith.mulf %105, %24 : vector<2x32xf32>
    %107 = vector.extract_strided_slice %82 {offsets = [0, 7], sizes = [2, 1], strides = [1, 1]} : vector<2x8xf32> to vector<2x1xf32>
    %108 = vector.broadcast %107 : vector<2x1xf32> to vector<2x32xf32>
    %109 = arith.mulf %108, %27 : vector<2x32xf32>
    %110 = arith.addf %88, %91 : vector<2x32xf32>
    %111 = arith.addf %94, %97 : vector<2x32xf32>
    %112 = arith.addf %100, %103 : vector<2x32xf32>
    %113 = arith.addf %106, %109 : vector<2x32xf32>
    %114 = arith.addf %110, %111 : vector<2x32xf32>
    %115 = arith.addf %112, %113 : vector<2x32xf32>
    %116 = arith.addf %114, %115 : vector<2x32xf32>
    %117 = arith.addf %85, %116 : vector<2x32xf32>
    %118 = arith.negf %117 : vector<2x32xf32>
    %119 = math.exp %118 : vector<2x32xf32>
    %cst_13 = arith.constant 1.000000e+00 : f32
    %120 = vector.broadcast %cst_13 : f32 to vector<2x32xf32>
    %121 = arith.addf %120, %119 : vector<2x32xf32>
    %122 = arith.divf %120, %121 : vector<2x32xf32>
    %123 = vector.extract_strided_slice %122 {offsets = [0, 0], sizes = [2, 8], strides = [1, 1]} : vector<2x32xf32> to vector<2x8xf32>
    %124 = vector.extract_strided_slice %122 {offsets = [0, 8], sizes = [2, 8], strides = [1, 1]} : vector<2x32xf32> to vector<2x8xf32>
    %125 = vector.extract_strided_slice %122 {offsets = [0, 16], sizes = [2, 8], strides = [1, 1]} : vector<2x32xf32> to vector<2x8xf32>
    %126 = vector.extract_strided_slice %122 {offsets = [0, 24], sizes = [2, 8], strides = [1, 1]} : vector<2x32xf32> to vector<2x8xf32>
    %cst_14 = arith.constant 2.000000e+00 : f32
    %127 = vector.broadcast %cst_14 : f32 to vector<2x8xf32>
    %128 = arith.mulf %127, %126 : vector<2x8xf32>
    %cst_15 = arith.constant 1.000000e+00 : f32
    %129 = vector.broadcast %cst_15 : f32 to vector<2x8xf32>
    %130 = arith.subf %128, %129 : vector<2x8xf32>
    %131 = arith.mulf %124, %80 : vector<2x8xf32>
    %132 = arith.mulf %123, %130 : vector<2x8xf32>
    %133 = arith.addf %131, %132 : vector<2x8xf32>
    %134 = math.tanh %133 : vector<2x8xf32>
    %135 = arith.mulf %125, %134 : vector<2x8xf32>
    %c2_i32 = arith.constant 2 : i32
    %136 = arith.index_cast %c2_i32 : i32 to index
    %c0_16 = arith.constant 0 : index
    %c0_17 = arith.constant 0 : index
    %137 = vector.load %arg2[%136, %c0_16, %c0_17] : memref<8x2x32xf32, #tpu.memory_space<vmem>>, vector<1x2x32xf32>
    %138 = vector.shape_cast %137 : vector<1x2x32xf32> to vector<2x32xf32>
    %139 = vector.extract_strided_slice %135 {offsets = [0, 0], sizes = [2, 1], strides = [1, 1]} : vector<2x8xf32> to vector<2x1xf32>
    %140 = vector.broadcast %139 : vector<2x1xf32> to vector<2x32xf32>
    %141 = arith.mulf %140, %6 : vector<2x32xf32>
    %142 = vector.extract_strided_slice %135 {offsets = [0, 1], sizes = [2, 1], strides = [1, 1]} : vector<2x8xf32> to vector<2x1xf32>
    %143 = vector.broadcast %142 : vector<2x1xf32> to vector<2x32xf32>
    %144 = arith.mulf %143, %9 : vector<2x32xf32>
    %145 = vector.extract_strided_slice %135 {offsets = [0, 2], sizes = [2, 1], strides = [1, 1]} : vector<2x8xf32> to vector<2x1xf32>
    %146 = vector.broadcast %145 : vector<2x1xf32> to vector<2x32xf32>
    %147 = arith.mulf %146, %12 : vector<2x32xf32>
    %148 = vector.extract_strided_slice %135 {offsets = [0, 3], sizes = [2, 1], strides = [1, 1]} : vector<2x8xf32> to vector<2x1xf32>
    %149 = vector.broadcast %148 : vector<2x1xf32> to vector<2x32xf32>
    %150 = arith.mulf %149, %15 : vector<2x32xf32>
    %151 = vector.extract_strided_slice %135 {offsets = [0, 4], sizes = [2, 1], strides = [1, 1]} : vector<2x8xf32> to vector<2x1xf32>
    %152 = vector.broadcast %151 : vector<2x1xf32> to vector<2x32xf32>
    %153 = arith.mulf %152, %18 : vector<2x32xf32>
    %154 = vector.extract_strided_slice %135 {offsets = [0, 5], sizes = [2, 1], strides = [1, 1]} : vector<2x8xf32> to vector<2x1xf32>
    %155 = vector.broadcast %154 : vector<2x1xf32> to vector<2x32xf32>
    %156 = arith.mulf %155, %21 : vector<2x32xf32>
    %157 = vector.extract_strided_slice %135 {offsets = [0, 6], sizes = [2, 1], strides = [1, 1]} : vector<2x8xf32> to vector<2x1xf32>
    %158 = vector.broadcast %157 : vector<2x1xf32> to vector<2x32xf32>
    %159 = arith.mulf %158, %24 : vector<2x32xf32>
    %160 = vector.extract_strided_slice %135 {offsets = [0, 7], sizes = [2, 1], strides = [1, 1]} : vector<2x8xf32> to vector<2x1xf32>
    %161 = vector.broadcast %160 : vector<2x1xf32> to vector<2x32xf32>
    %162 = arith.mulf %161, %27 : vector<2x32xf32>
    %163 = arith.addf %141, %144 : vector<2x32xf32>
    %164 = arith.addf %147, %150 : vector<2x32xf32>
    %165 = arith.addf %153, %156 : vector<2x32xf32>
    %166 = arith.addf %159, %162 : vector<2x32xf32>
    %167 = arith.addf %163, %164 : vector<2x32xf32>
    %168 = arith.addf %165, %166 : vector<2x32xf32>
    %169 = arith.addf %167, %168 : vector<2x32xf32>
    %170 = arith.addf %138, %169 : vector<2x32xf32>
    %171 = arith.negf %170 : vector<2x32xf32>
    %172 = math.exp %171 : vector<2x32xf32>
    %cst_18 = arith.constant 1.000000e+00 : f32
    %173 = vector.broadcast %cst_18 : f32 to vector<2x32xf32>
    %174 = arith.addf %173, %172 : vector<2x32xf32>
    %175 = arith.divf %173, %174 : vector<2x32xf32>
    %176 = vector.extract_strided_slice %175 {offsets = [0, 0], sizes = [2, 8], strides = [1, 1]} : vector<2x32xf32> to vector<2x8xf32>
    %177 = vector.extract_strided_slice %175 {offsets = [0, 8], sizes = [2, 8], strides = [1, 1]} : vector<2x32xf32> to vector<2x8xf32>
    %178 = vector.extract_strided_slice %175 {offsets = [0, 16], sizes = [2, 8], strides = [1, 1]} : vector<2x32xf32> to vector<2x8xf32>
    %179 = vector.extract_strided_slice %175 {offsets = [0, 24], sizes = [2, 8], strides = [1, 1]} : vector<2x32xf32> to vector<2x8xf32>
    %cst_19 = arith.constant 2.000000e+00 : f32
    %180 = vector.broadcast %cst_19 : f32 to vector<2x8xf32>
    %181 = arith.mulf %180, %179 : vector<2x8xf32>
    %cst_20 = arith.constant 1.000000e+00 : f32
    %182 = vector.broadcast %cst_20 : f32 to vector<2x8xf32>
    %183 = arith.subf %181, %182 : vector<2x8xf32>
    %184 = arith.mulf %177, %133 : vector<2x8xf32>
    %185 = arith.mulf %176, %183 : vector<2x8xf32>
    %186 = arith.addf %184, %185 : vector<2x8xf32>
    %187 = math.tanh %186 : vector<2x8xf32>
    %188 = arith.mulf %178, %187 : vector<2x8xf32>
    %c3_i32 = arith.constant 3 : i32
    %189 = arith.index_cast %c3_i32 : i32 to index
    %c0_21 = arith.constant 0 : index
    %c0_22 = arith.constant 0 : index
    %190 = vector.load %arg2[%189, %c0_21, %c0_22] : memref<8x2x32xf32, #tpu.memory_space<vmem>>, vector<1x2x32xf32>
    %191 = vector.shape_cast %190 : vector<1x2x32xf32> to vector<2x32xf32>
    %192 = vector.extract_strided_slice %188 {offsets = [0, 0], sizes = [2, 1], strides = [1, 1]} : vector<2x8xf32> to vector<2x1xf32>
    %193 = vector.broadcast %192 : vector<2x1xf32> to vector<2x32xf32>
    %194 = arith.mulf %193, %6 : vector<2x32xf32>
    %195 = vector.extract_strided_slice %188 {offsets = [0, 1], sizes = [2, 1], strides = [1, 1]} : vector<2x8xf32> to vector<2x1xf32>
    %196 = vector.broadcast %195 : vector<2x1xf32> to vector<2x32xf32>
    %197 = arith.mulf %196, %9 : vector<2x32xf32>
    %198 = vector.extract_strided_slice %188 {offsets = [0, 2], sizes = [2, 1], strides = [1, 1]} : vector<2x8xf32> to vector<2x1xf32>
    %199 = vector.broadcast %198 : vector<2x1xf32> to vector<2x32xf32>
    %200 = arith.mulf %199, %12 : vector<2x32xf32>
    %201 = vector.extract_strided_slice %188 {offsets = [0, 3], sizes = [2, 1], strides = [1, 1]} : vector<2x8xf32> to vector<2x1xf32>
    %202 = vector.broadcast %201 : vector<2x1xf32> to vector<2x32xf32>
    %203 = arith.mulf %202, %15 : vector<2x32xf32>
    %204 = vector.extract_strided_slice %188 {offsets = [0, 4], sizes = [2, 1], strides = [1, 1]} : vector<2x8xf32> to vector<2x1xf32>
    %205 = vector.broadcast %204 : vector<2x1xf32> to vector<2x32xf32>
    %206 = arith.mulf %205, %18 : vector<2x32xf32>
    %207 = vector.extract_strided_slice %188 {offsets = [0, 5], sizes = [2, 1], strides = [1, 1]} : vector<2x8xf32> to vector<2x1xf32>
    %208 = vector.broadcast %207 : vector<2x1xf32> to vector<2x32xf32>
    %209 = arith.mulf %208, %21 : vector<2x32xf32>
    %210 = vector.extract_strided_slice %188 {offsets = [0, 6], sizes = [2, 1], strides = [1, 1]} : vector<2x8xf32> to vector<2x1xf32>
    %211 = vector.broadcast %210 : vector<2x1xf32> to vector<2x32xf32>
    %212 = arith.mulf %211, %24 : vector<2x32xf32>
    %213 = vector.extract_strided_slice %188 {offsets = [0, 7], sizes = [2, 1], strides = [1, 1]} : vector<2x8xf32> to vector<2x1xf32>
    %214 = vector.broadcast %213 : vector<2x1xf32> to vector<2x32xf32>
    %215 = arith.mulf %214, %27 : vector<2x32xf32>
    %216 = arith.addf %194, %197 : vector<2x32xf32>
    %217 = arith.addf %200, %203 : vector<2x32xf32>
    %218 = arith.addf %206, %209 : vector<2x32xf32>
    %219 = arith.addf %212, %215 : vector<2x32xf32>
    %220 = arith.addf %216, %217 : vector<2x32xf32>
    %221 = arith.addf %218, %219 : vector<2x32xf32>
    %222 = arith.addf %220, %221 : vector<2x32xf32>
    %223 = arith.addf %191, %222 : vector<2x32xf32>
    %224 = arith.negf %223 : vector<2x32xf32>
    %225 = math.exp %224 : vector<2x32xf32>
    %cst_23 = arith.constant 1.000000e+00 : f32
    %226 = vector.broadcast %cst_23 : f32 to vector<2x32xf32>
    %227 = arith.addf %226, %225 : vector<2x32xf32>
    %228 = arith.divf %226, %227 : vector<2x32xf32>
    %229 = vector.extract_strided_slice %228 {offsets = [0, 0], sizes = [2, 8], strides = [1, 1]} : vector<2x32xf32> to vector<2x8xf32>
    %230 = vector.extract_strided_slice %228 {offsets = [0, 8], sizes = [2, 8], strides = [1, 1]} : vector<2x32xf32> to vector<2x8xf32>
    %231 = vector.extract_strided_slice %228 {offsets = [0, 16], sizes = [2, 8], strides = [1, 1]} : vector<2x32xf32> to vector<2x8xf32>
    %232 = vector.extract_strided_slice %228 {offsets = [0, 24], sizes = [2, 8], strides = [1, 1]} : vector<2x32xf32> to vector<2x8xf32>
    %cst_24 = arith.constant 2.000000e+00 : f32
    %233 = vector.broadcast %cst_24 : f32 to vector<2x8xf32>
    %234 = arith.mulf %233, %232 : vector<2x8xf32>
    %cst_25 = arith.constant 1.000000e+00 : f32
    %235 = vector.broadcast %cst_25 : f32 to vector<2x8xf32>
    %236 = arith.subf %234, %235 : vector<2x8xf32>
    %237 = arith.mulf %230, %186 : vector<2x8xf32>
    %238 = arith.mulf %229, %236 : vector<2x8xf32>
    %239 = arith.addf %237, %238 : vector<2x8xf32>
    %240 = math.tanh %239 : vector<2x8xf32>
    %241 = arith.mulf %231, %240 : vector<2x8xf32>
    %c4_i32 = arith.constant 4 : i32
    %242 = arith.index_cast %c4_i32 : i32 to index
    %c0_26 = arith.constant 0 : index
    %c0_27 = arith.constant 0 : index
    %243 = vector.load %arg2[%242, %c0_26, %c0_27] : memref<8x2x32xf32, #tpu.memory_space<vmem>>, vector<1x2x32xf32>
    %244 = vector.shape_cast %243 : vector<1x2x32xf32> to vector<2x32xf32>
    %245 = vector.extract_strided_slice %241 {offsets = [0, 0], sizes = [2, 1], strides = [1, 1]} : vector<2x8xf32> to vector<2x1xf32>
    %246 = vector.broadcast %245 : vector<2x1xf32> to vector<2x32xf32>
    %247 = arith.mulf %246, %6 : vector<2x32xf32>
    %248 = vector.extract_strided_slice %241 {offsets = [0, 1], sizes = [2, 1], strides = [1, 1]} : vector<2x8xf32> to vector<2x1xf32>
    %249 = vector.broadcast %248 : vector<2x1xf32> to vector<2x32xf32>
    %250 = arith.mulf %249, %9 : vector<2x32xf32>
    %251 = vector.extract_strided_slice %241 {offsets = [0, 2], sizes = [2, 1], strides = [1, 1]} : vector<2x8xf32> to vector<2x1xf32>
    %252 = vector.broadcast %251 : vector<2x1xf32> to vector<2x32xf32>
    %253 = arith.mulf %252, %12 : vector<2x32xf32>
    %254 = vector.extract_strided_slice %241 {offsets = [0, 3], sizes = [2, 1], strides = [1, 1]} : vector<2x8xf32> to vector<2x1xf32>
    %255 = vector.broadcast %254 : vector<2x1xf32> to vector<2x32xf32>
    %256 = arith.mulf %255, %15 : vector<2x32xf32>
    %257 = vector.extract_strided_slice %241 {offsets = [0, 4], sizes = [2, 1], strides = [1, 1]} : vector<2x8xf32> to vector<2x1xf32>
    %258 = vector.broadcast %257 : vector<2x1xf32> to vector<2x32xf32>
    %259 = arith.mulf %258, %18 : vector<2x32xf32>
    %260 = vector.extract_strided_slice %241 {offsets = [0, 5], sizes = [2, 1], strides = [1, 1]} : vector<2x8xf32> to vector<2x1xf32>
    %261 = vector.broadcast %260 : vector<2x1xf32> to vector<2x32xf32>
    %262 = arith.mulf %261, %21 : vector<2x32xf32>
    %263 = vector.extract_strided_slice %241 {offsets = [0, 6], sizes = [2, 1], strides = [1, 1]} : vector<2x8xf32> to vector<2x1xf32>
    %264 = vector.broadcast %263 : vector<2x1xf32> to vector<2x32xf32>
    %265 = arith.mulf %264, %24 : vector<2x32xf32>
    %266 = vector.extract_strided_slice %241 {offsets = [0, 7], sizes = [2, 1], strides = [1, 1]} : vector<2x8xf32> to vector<2x1xf32>
    %267 = vector.broadcast %266 : vector<2x1xf32> to vector<2x32xf32>
    %268 = arith.mulf %267, %27 : vector<2x32xf32>
    %269 = arith.addf %247, %250 : vector<2x32xf32>
    %270 = arith.addf %253, %256 : vector<2x32xf32>
    %271 = arith.addf %259, %262 : vector<2x32xf32>
    %272 = arith.addf %265, %268 : vector<2x32xf32>
    %273 = arith.addf %269, %270 : vector<2x32xf32>
    %274 = arith.addf %271, %272 : vector<2x32xf32>
    %275 = arith.addf %273, %274 : vector<2x32xf32>
    %276 = arith.addf %244, %275 : vector<2x32xf32>
    %277 = arith.negf %276 : vector<2x32xf32>
    %278 = math.exp %277 : vector<2x32xf32>
    %cst_28 = arith.constant 1.000000e+00 : f32
    %279 = vector.broadcast %cst_28 : f32 to vector<2x32xf32>
    %280 = arith.addf %279, %278 : vector<2x32xf32>
    %281 = arith.divf %279, %280 : vector<2x32xf32>
    %282 = vector.extract_strided_slice %281 {offsets = [0, 0], sizes = [2, 8], strides = [1, 1]} : vector<2x32xf32> to vector<2x8xf32>
    %283 = vector.extract_strided_slice %281 {offsets = [0, 8], sizes = [2, 8], strides = [1, 1]} : vector<2x32xf32> to vector<2x8xf32>
    %284 = vector.extract_strided_slice %281 {offsets = [0, 16], sizes = [2, 8], strides = [1, 1]} : vector<2x32xf32> to vector<2x8xf32>
    %285 = vector.extract_strided_slice %281 {offsets = [0, 24], sizes = [2, 8], strides = [1, 1]} : vector<2x32xf32> to vector<2x8xf32>
    %cst_29 = arith.constant 2.000000e+00 : f32
    %286 = vector.broadcast %cst_29 : f32 to vector<2x8xf32>
    %287 = arith.mulf %286, %285 : vector<2x8xf32>
    %cst_30 = arith.constant 1.000000e+00 : f32
    %288 = vector.broadcast %cst_30 : f32 to vector<2x8xf32>
    %289 = arith.subf %287, %288 : vector<2x8xf32>
    %290 = arith.mulf %283, %239 : vector<2x8xf32>
    %291 = arith.mulf %282, %289 : vector<2x8xf32>
    %292 = arith.addf %290, %291 : vector<2x8xf32>
    %293 = math.tanh %292 : vector<2x8xf32>
    %294 = arith.mulf %284, %293 : vector<2x8xf32>
    %c5_i32 = arith.constant 5 : i32
    %295 = arith.index_cast %c5_i32 : i32 to index
    %c0_31 = arith.constant 0 : index
    %c0_32 = arith.constant 0 : index
    %296 = vector.load %arg2[%295, %c0_31, %c0_32] : memref<8x2x32xf32, #tpu.memory_space<vmem>>, vector<1x2x32xf32>
    %297 = vector.shape_cast %296 : vector<1x2x32xf32> to vector<2x32xf32>
    %298 = vector.extract_strided_slice %294 {offsets = [0, 0], sizes = [2, 1], strides = [1, 1]} : vector<2x8xf32> to vector<2x1xf32>
    %299 = vector.broadcast %298 : vector<2x1xf32> to vector<2x32xf32>
    %300 = arith.mulf %299, %6 : vector<2x32xf32>
    %301 = vector.extract_strided_slice %294 {offsets = [0, 1], sizes = [2, 1], strides = [1, 1]} : vector<2x8xf32> to vector<2x1xf32>
    %302 = vector.broadcast %301 : vector<2x1xf32> to vector<2x32xf32>
    %303 = arith.mulf %302, %9 : vector<2x32xf32>
    %304 = vector.extract_strided_slice %294 {offsets = [0, 2], sizes = [2, 1], strides = [1, 1]} : vector<2x8xf32> to vector<2x1xf32>
    %305 = vector.broadcast %304 : vector<2x1xf32> to vector<2x32xf32>
    %306 = arith.mulf %305, %12 : vector<2x32xf32>
    %307 = vector.extract_strided_slice %294 {offsets = [0, 3], sizes = [2, 1], strides = [1, 1]} : vector<2x8xf32> to vector<2x1xf32>
    %308 = vector.broadcast %307 : vector<2x1xf32> to vector<2x32xf32>
    %309 = arith.mulf %308, %15 : vector<2x32xf32>
    %310 = vector.extract_strided_slice %294 {offsets = [0, 4], sizes = [2, 1], strides = [1, 1]} : vector<2x8xf32> to vector<2x1xf32>
    %311 = vector.broadcast %310 : vector<2x1xf32> to vector<2x32xf32>
    %312 = arith.mulf %311, %18 : vector<2x32xf32>
    %313 = vector.extract_strided_slice %294 {offsets = [0, 5], sizes = [2, 1], strides = [1, 1]} : vector<2x8xf32> to vector<2x1xf32>
    %314 = vector.broadcast %313 : vector<2x1xf32> to vector<2x32xf32>
    %315 = arith.mulf %314, %21 : vector<2x32xf32>
    %316 = vector.extract_strided_slice %294 {offsets = [0, 6], sizes = [2, 1], strides = [1, 1]} : vector<2x8xf32> to vector<2x1xf32>
    %317 = vector.broadcast %316 : vector<2x1xf32> to vector<2x32xf32>
    %318 = arith.mulf %317, %24 : vector<2x32xf32>
    %319 = vector.extract_strided_slice %294 {offsets = [0, 7], sizes = [2, 1], strides = [1, 1]} : vector<2x8xf32> to vector<2x1xf32>
    %320 = vector.broadcast %319 : vector<2x1xf32> to vector<2x32xf32>
    %321 = arith.mulf %320, %27 : vector<2x32xf32>
    %322 = arith.addf %300, %303 : vector<2x32xf32>
    %323 = arith.addf %306, %309 : vector<2x32xf32>
    %324 = arith.addf %312, %315 : vector<2x32xf32>
    %325 = arith.addf %318, %321 : vector<2x32xf32>
    %326 = arith.addf %322, %323 : vector<2x32xf32>
    %327 = arith.addf %324, %325 : vector<2x32xf32>
    %328 = arith.addf %326, %327 : vector<2x32xf32>
    %329 = arith.addf %297, %328 : vector<2x32xf32>
    %330 = arith.negf %329 : vector<2x32xf32>
    %331 = math.exp %330 : vector<2x32xf32>
    %cst_33 = arith.constant 1.000000e+00 : f32
    %332 = vector.broadcast %cst_33 : f32 to vector<2x32xf32>
    %333 = arith.addf %332, %331 : vector<2x32xf32>
    %334 = arith.divf %332, %333 : vector<2x32xf32>
    %335 = vector.extract_strided_slice %334 {offsets = [0, 0], sizes = [2, 8], strides = [1, 1]} : vector<2x32xf32> to vector<2x8xf32>
    %336 = vector.extract_strided_slice %334 {offsets = [0, 8], sizes = [2, 8], strides = [1, 1]} : vector<2x32xf32> to vector<2x8xf32>
    %337 = vector.extract_strided_slice %334 {offsets = [0, 16], sizes = [2, 8], strides = [1, 1]} : vector<2x32xf32> to vector<2x8xf32>
    %338 = vector.extract_strided_slice %334 {offsets = [0, 24], sizes = [2, 8], strides = [1, 1]} : vector<2x32xf32> to vector<2x8xf32>
    %cst_34 = arith.constant 2.000000e+00 : f32
    %339 = vector.broadcast %cst_34 : f32 to vector<2x8xf32>
    %340 = arith.mulf %339, %338 : vector<2x8xf32>
    %cst_35 = arith.constant 1.000000e+00 : f32
    %341 = vector.broadcast %cst_35 : f32 to vector<2x8xf32>
    %342 = arith.subf %340, %341 : vector<2x8xf32>
    %343 = arith.mulf %336, %292 : vector<2x8xf32>
    %344 = arith.mulf %335, %342 : vector<2x8xf32>
    %345 = arith.addf %343, %344 : vector<2x8xf32>
    %346 = math.tanh %345 : vector<2x8xf32>
    %347 = arith.mulf %337, %346 : vector<2x8xf32>
    %c6_i32 = arith.constant 6 : i32
    %348 = arith.index_cast %c6_i32 : i32 to index
    %c0_36 = arith.constant 0 : index
    %c0_37 = arith.constant 0 : index
    %349 = vector.load %arg2[%348, %c0_36, %c0_37] : memref<8x2x32xf32, #tpu.memory_space<vmem>>, vector<1x2x32xf32>
    %350 = vector.shape_cast %349 : vector<1x2x32xf32> to vector<2x32xf32>
    %351 = vector.extract_strided_slice %347 {offsets = [0, 0], sizes = [2, 1], strides = [1, 1]} : vector<2x8xf32> to vector<2x1xf32>
    %352 = vector.broadcast %351 : vector<2x1xf32> to vector<2x32xf32>
    %353 = arith.mulf %352, %6 : vector<2x32xf32>
    %354 = vector.extract_strided_slice %347 {offsets = [0, 1], sizes = [2, 1], strides = [1, 1]} : vector<2x8xf32> to vector<2x1xf32>
    %355 = vector.broadcast %354 : vector<2x1xf32> to vector<2x32xf32>
    %356 = arith.mulf %355, %9 : vector<2x32xf32>
    %357 = vector.extract_strided_slice %347 {offsets = [0, 2], sizes = [2, 1], strides = [1, 1]} : vector<2x8xf32> to vector<2x1xf32>
    %358 = vector.broadcast %357 : vector<2x1xf32> to vector<2x32xf32>
    %359 = arith.mulf %358, %12 : vector<2x32xf32>
    %360 = vector.extract_strided_slice %347 {offsets = [0, 3], sizes = [2, 1], strides = [1, 1]} : vector<2x8xf32> to vector<2x1xf32>
    %361 = vector.broadcast %360 : vector<2x1xf32> to vector<2x32xf32>
    %362 = arith.mulf %361, %15 : vector<2x32xf32>
    %363 = vector.extract_strided_slice %347 {offsets = [0, 4], sizes = [2, 1], strides = [1, 1]} : vector<2x8xf32> to vector<2x1xf32>
    %364 = vector.broadcast %363 : vector<2x1xf32> to vector<2x32xf32>
    %365 = arith.mulf %364, %18 : vector<2x32xf32>
    %366 = vector.extract_strided_slice %347 {offsets = [0, 5], sizes = [2, 1], strides = [1, 1]} : vector<2x8xf32> to vector<2x1xf32>
    %367 = vector.broadcast %366 : vector<2x1xf32> to vector<2x32xf32>
    %368 = arith.mulf %367, %21 : vector<2x32xf32>
    %369 = vector.extract_strided_slice %347 {offsets = [0, 6], sizes = [2, 1], strides = [1, 1]} : vector<2x8xf32> to vector<2x1xf32>
    %370 = vector.broadcast %369 : vector<2x1xf32> to vector<2x32xf32>
    %371 = arith.mulf %370, %24 : vector<2x32xf32>
    %372 = vector.extract_strided_slice %347 {offsets = [0, 7], sizes = [2, 1], strides = [1, 1]} : vector<2x8xf32> to vector<2x1xf32>
    %373 = vector.broadcast %372 : vector<2x1xf32> to vector<2x32xf32>
    %374 = arith.mulf %373, %27 : vector<2x32xf32>
    %375 = arith.addf %353, %356 : vector<2x32xf32>
    %376 = arith.addf %359, %362 : vector<2x32xf32>
    %377 = arith.addf %365, %368 : vector<2x32xf32>
    %378 = arith.addf %371, %374 : vector<2x32xf32>
    %379 = arith.addf %375, %376 : vector<2x32xf32>
    %380 = arith.addf %377, %378 : vector<2x32xf32>
    %381 = arith.addf %379, %380 : vector<2x32xf32>
    %382 = arith.addf %350, %381 : vector<2x32xf32>
    %383 = arith.negf %382 : vector<2x32xf32>
    %384 = math.exp %383 : vector<2x32xf32>
    %cst_38 = arith.constant 1.000000e+00 : f32
    %385 = vector.broadcast %cst_38 : f32 to vector<2x32xf32>
    %386 = arith.addf %385, %384 : vector<2x32xf32>
    %387 = arith.divf %385, %386 : vector<2x32xf32>
    %388 = vector.extract_strided_slice %387 {offsets = [0, 0], sizes = [2, 8], strides = [1, 1]} : vector<2x32xf32> to vector<2x8xf32>
    %389 = vector.extract_strided_slice %387 {offsets = [0, 8], sizes = [2, 8], strides = [1, 1]} : vector<2x32xf32> to vector<2x8xf32>
    %390 = vector.extract_strided_slice %387 {offsets = [0, 16], sizes = [2, 8], strides = [1, 1]} : vector<2x32xf32> to vector<2x8xf32>
    %391 = vector.extract_strided_slice %387 {offsets = [0, 24], sizes = [2, 8], strides = [1, 1]} : vector<2x32xf32> to vector<2x8xf32>
    %cst_39 = arith.constant 2.000000e+00 : f32
    %392 = vector.broadcast %cst_39 : f32 to vector<2x8xf32>
    %393 = arith.mulf %392, %391 : vector<2x8xf32>
    %cst_40 = arith.constant 1.000000e+00 : f32
    %394 = vector.broadcast %cst_40 : f32 to vector<2x8xf32>
    %395 = arith.subf %393, %394 : vector<2x8xf32>
    %396 = arith.mulf %389, %345 : vector<2x8xf32>
    %397 = arith.mulf %388, %395 : vector<2x8xf32>
    %398 = arith.addf %396, %397 : vector<2x8xf32>
    %399 = math.tanh %398 : vector<2x8xf32>
    %400 = arith.mulf %390, %399 : vector<2x8xf32>
    %c7_i32 = arith.constant 7 : i32
    %401 = arith.index_cast %c7_i32 : i32 to index
    %c0_41 = arith.constant 0 : index
    %c0_42 = arith.constant 0 : index
    %402 = vector.load %arg2[%401, %c0_41, %c0_42] : memref<8x2x32xf32, #tpu.memory_space<vmem>>, vector<1x2x32xf32>
    %403 = vector.shape_cast %402 : vector<1x2x32xf32> to vector<2x32xf32>
    %404 = vector.extract_strided_slice %400 {offsets = [0, 0], sizes = [2, 1], strides = [1, 1]} : vector<2x8xf32> to vector<2x1xf32>
    %405 = vector.broadcast %404 : vector<2x1xf32> to vector<2x32xf32>
    %406 = arith.mulf %405, %6 : vector<2x32xf32>
    %407 = vector.extract_strided_slice %400 {offsets = [0, 1], sizes = [2, 1], strides = [1, 1]} : vector<2x8xf32> to vector<2x1xf32>
    %408 = vector.broadcast %407 : vector<2x1xf32> to vector<2x32xf32>
    %409 = arith.mulf %408, %9 : vector<2x32xf32>
    %410 = vector.extract_strided_slice %400 {offsets = [0, 2], sizes = [2, 1], strides = [1, 1]} : vector<2x8xf32> to vector<2x1xf32>
    %411 = vector.broadcast %410 : vector<2x1xf32> to vector<2x32xf32>
    %412 = arith.mulf %411, %12 : vector<2x32xf32>
    %413 = vector.extract_strided_slice %400 {offsets = [0, 3], sizes = [2, 1], strides = [1, 1]} : vector<2x8xf32> to vector<2x1xf32>
    %414 = vector.broadcast %413 : vector<2x1xf32> to vector<2x32xf32>
    %415 = arith.mulf %414, %15 : vector<2x32xf32>
    %416 = vector.extract_strided_slice %400 {offsets = [0, 4], sizes = [2, 1], strides = [1, 1]} : vector<2x8xf32> to vector<2x1xf32>
    %417 = vector.broadcast %416 : vector<2x1xf32> to vector<2x32xf32>
    %418 = arith.mulf %417, %18 : vector<2x32xf32>
    %419 = vector.extract_strided_slice %400 {offsets = [0, 5], sizes = [2, 1], strides = [1, 1]} : vector<2x8xf32> to vector<2x1xf32>
    %420 = vector.broadcast %419 : vector<2x1xf32> to vector<2x32xf32>
    %421 = arith.mulf %420, %21 : vector<2x32xf32>
    %422 = vector.extract_strided_slice %400 {offsets = [0, 6], sizes = [2, 1], strides = [1, 1]} : vector<2x8xf32> to vector<2x1xf32>
    %423 = vector.broadcast %422 : vector<2x1xf32> to vector<2x32xf32>
    %424 = arith.mulf %423, %24 : vector<2x32xf32>
    %425 = vector.extract_strided_slice %400 {offsets = [0, 7], sizes = [2, 1], strides = [1, 1]} : vector<2x8xf32> to vector<2x1xf32>
    %426 = vector.broadcast %425 : vector<2x1xf32> to vector<2x32xf32>
    %427 = arith.mulf %426, %27 : vector<2x32xf32>
    %428 = arith.addf %406, %409 : vector<2x32xf32>
    %429 = arith.addf %412, %415 : vector<2x32xf32>
    %430 = arith.addf %418, %421 : vector<2x32xf32>
    %431 = arith.addf %424, %427 : vector<2x32xf32>
    %432 = arith.addf %428, %429 : vector<2x32xf32>
    %433 = arith.addf %430, %431 : vector<2x32xf32>
    %434 = arith.addf %432, %433 : vector<2x32xf32>
    %435 = arith.addf %403, %434 : vector<2x32xf32>
    %436 = arith.negf %435 : vector<2x32xf32>
    %437 = math.exp %436 : vector<2x32xf32>
    %cst_43 = arith.constant 1.000000e+00 : f32
    %438 = vector.broadcast %cst_43 : f32 to vector<2x32xf32>
    %439 = arith.addf %438, %437 : vector<2x32xf32>
    %440 = arith.divf %438, %439 : vector<2x32xf32>
    %441 = vector.extract_strided_slice %440 {offsets = [0, 0], sizes = [2, 8], strides = [1, 1]} : vector<2x32xf32> to vector<2x8xf32>
    %442 = vector.extract_strided_slice %440 {offsets = [0, 8], sizes = [2, 8], strides = [1, 1]} : vector<2x32xf32> to vector<2x8xf32>
    %443 = vector.extract_strided_slice %440 {offsets = [0, 16], sizes = [2, 8], strides = [1, 1]} : vector<2x32xf32> to vector<2x8xf32>
    %444 = vector.extract_strided_slice %440 {offsets = [0, 24], sizes = [2, 8], strides = [1, 1]} : vector<2x32xf32> to vector<2x8xf32>
    %cst_44 = arith.constant 2.000000e+00 : f32
    %445 = vector.broadcast %cst_44 : f32 to vector<2x8xf32>
    %446 = arith.mulf %445, %444 : vector<2x8xf32>
    %cst_45 = arith.constant 1.000000e+00 : f32
    %447 = vector.broadcast %cst_45 : f32 to vector<2x8xf32>
    %448 = arith.subf %446, %447 : vector<2x8xf32>
    %449 = arith.mulf %442, %398 : vector<2x8xf32>
    %450 = arith.mulf %441, %448 : vector<2x8xf32>
    %451 = arith.addf %449, %450 : vector<2x8xf32>
    %452 = math.tanh %451 : vector<2x8xf32>
    %453 = arith.mulf %443, %452 : vector<2x8xf32>
    %c8_i32 = arith.constant 8 : i32
    %c0_46 = arith.constant 0 : index
    %c0_47 = arith.constant 0 : index
    %454 = vector.load %arg7[%c0_46, %c0_47] : memref<2x8xf32, #tpu.memory_space<vmem>>, vector<2x8xf32>
    tpu.vector_store %arg7[%c0_46, %c0_47], %453 {strides = array<i32>} : memref<2x8xf32, #tpu.memory_space<vmem>>, vector<2x8xf32>,
    %c0_48 = arith.constant 0 : index
    %c0_49 = arith.constant 0 : index
    %455 = vector.load %arg8[%c0_48, %c0_49] : memref<2x8xf32, #tpu.memory_space<vmem>>, vector<2x8xf32>
    tpu.vector_store %arg8[%c0_48, %c0_49], %451 {strides = array<i32>} : memref<2x8xf32, #tpu.memory_space<vmem>>, vector<2x8xf32>,
    %c0_i32_50 = arith.constant 0 : i32
    %456 = arith.cmpi eq, %arg1, %c0_i32_50 : i32
    %457 = arith.extui %456 : i1 to i32
    %c0_i32_51 = arith.constant 0 : i32
    %458 = arith.cmpi ne, %457, %c0_i32_51 : i32
    scf.if %458 {
      %c0_52 = arith.constant 0 : index
      %c0_53 = arith.constant 0 : index
      %459 = vector.load %arg4[%c0_52, %c0_53] : memref<8x2xf32, #tpu.memory_space<vmem>>, vector<8x2xf32>
      %c0_54 = arith.constant 0 : index
      %c0_55 = arith.constant 0 : index
      %460 = vector.load %arg5[%c0_54, %c0_55] : memref<1x2xf32, #tpu.memory_space<vmem>>, vector<1x2xf32>
      %461 = vector.shape_cast %460 : vector<1x2xf32> to vector<1x2xf32>
      %462 = vector.broadcast %461 : vector<1x2xf32> to vector<2x2xf32>
      %463 = vector.extract_strided_slice %453 {offsets = [0, 0], sizes = [2, 1], strides = [1, 1]} : vector<2x8xf32> to vector<2x1xf32>
      %464 = vector.extract_strided_slice %459 {offsets = [0, 0], sizes = [1, 2], strides = [1, 1]} : vector<8x2xf32> to vector<1x2xf32>
      %465 = vector.shape_cast %464 : vector<1x2xf32> to vector<1x2xf32>
      %466 = vector.broadcast %465 : vector<1x2xf32> to vector<2x2xf32>
      %467 = vector.broadcast %463 : vector<2x1xf32> to vector<2x2xf32>
      %468 = arith.mulf %467, %466 : vector<2x2xf32>
      %469 = vector.extract_strided_slice %453 {offsets = [0, 1], sizes = [2, 1], strides = [1, 1]} : vector<2x8xf32> to vector<2x1xf32>
      %470 = vector.extract_strided_slice %459 {offsets = [1, 0], sizes = [1, 2], strides = [1, 1]} : vector<8x2xf32> to vector<1x2xf32>
      %471 = vector.shape_cast %470 : vector<1x2xf32> to vector<1x2xf32>
      %472 = vector.broadcast %471 : vector<1x2xf32> to vector<2x2xf32>
      %473 = vector.broadcast %469 : vector<2x1xf32> to vector<2x2xf32>
      %474 = arith.mulf %473, %472 : vector<2x2xf32>
      %475 = vector.extract_strided_slice %453 {offsets = [0, 2], sizes = [2, 1], strides = [1, 1]} : vector<2x8xf32> to vector<2x1xf32>
      %476 = vector.extract_strided_slice %459 {offsets = [2, 0], sizes = [1, 2], strides = [1, 1]} : vector<8x2xf32> to vector<1x2xf32>
      %477 = vector.shape_cast %476 : vector<1x2xf32> to vector<1x2xf32>
      %478 = vector.broadcast %477 : vector<1x2xf32> to vector<2x2xf32>
      %479 = vector.broadcast %475 : vector<2x1xf32> to vector<2x2xf32>
      %480 = arith.mulf %479, %478 : vector<2x2xf32>
      %481 = vector.extract_strided_slice %453 {offsets = [0, 3], sizes = [2, 1], strides = [1, 1]} : vector<2x8xf32> to vector<2x1xf32>
      %482 = vector.extract_strided_slice %459 {offsets = [3, 0], sizes = [1, 2], strides = [1, 1]} : vector<8x2xf32> to vector<1x2xf32>
      %483 = vector.shape_cast %482 : vector<1x2xf32> to vector<1x2xf32>
      %484 = vector.broadcast %483 : vector<1x2xf32> to vector<2x2xf32>
      %485 = vector.broadcast %481 : vector<2x1xf32> to vector<2x2xf32>
      %486 = arith.mulf %485, %484 : vector<2x2xf32>
      %487 = vector.extract_strided_slice %453 {offsets = [0, 4], sizes = [2, 1], strides = [1, 1]} : vector<2x8xf32> to vector<2x1xf32>
      %488 = vector.extract_strided_slice %459 {offsets = [4, 0], sizes = [1, 2], strides = [1, 1]} : vector<8x2xf32> to vector<1x2xf32>
      %489 = vector.shape_cast %488 : vector<1x2xf32> to vector<1x2xf32>
      %490 = vector.broadcast %489 : vector<1x2xf32> to vector<2x2xf32>
      %491 = vector.broadcast %487 : vector<2x1xf32> to vector<2x2xf32>
      %492 = arith.mulf %491, %490 : vector<2x2xf32>
      %493 = vector.extract_strided_slice %453 {offsets = [0, 5], sizes = [2, 1], strides = [1, 1]} : vector<2x8xf32> to vector<2x1xf32>
      %494 = vector.extract_strided_slice %459 {offsets = [5, 0], sizes = [1, 2], strides = [1, 1]} : vector<8x2xf32> to vector<1x2xf32>
      %495 = vector.shape_cast %494 : vector<1x2xf32> to vector<1x2xf32>
      %496 = vector.broadcast %495 : vector<1x2xf32> to vector<2x2xf32>
      %497 = vector.broadcast %493 : vector<2x1xf32> to vector<2x2xf32>
      %498 = arith.mulf %497, %496 : vector<2x2xf32>
      %499 = vector.extract_strided_slice %453 {offsets = [0, 6], sizes = [2, 1], strides = [1, 1]} : vector<2x8xf32> to vector<2x1xf32>
      %500 = vector.extract_strided_slice %459 {offsets = [6, 0], sizes = [1, 2], strides = [1, 1]} : vector<8x2xf32> to vector<1x2xf32>
      %501 = vector.shape_cast %500 : vector<1x2xf32> to vector<1x2xf32>
      %502 = vector.broadcast %501 : vector<1x2xf32> to vector<2x2xf32>
      %503 = vector.broadcast %499 : vector<2x1xf32> to vector<2x2xf32>
      %504 = arith.mulf %503, %502 : vector<2x2xf32>
      %505 = vector.extract_strided_slice %453 {offsets = [0, 7], sizes = [2, 1], strides = [1, 1]} : vector<2x8xf32> to vector<2x1xf32>
      %506 = vector.extract_strided_slice %459 {offsets = [7, 0], sizes = [1, 2], strides = [1, 1]} : vector<8x2xf32> to vector<1x2xf32>
      %507 = vector.shape_cast %506 : vector<1x2xf32> to vector<1x2xf32>
      %508 = vector.broadcast %507 : vector<1x2xf32> to vector<2x2xf32>
      %509 = vector.broadcast %505 : vector<2x1xf32> to vector<2x2xf32>
      %510 = arith.mulf %509, %508 : vector<2x2xf32>
      %511 = arith.addf %468, %474 : vector<2x2xf32>
      %512 = arith.addf %480, %486 : vector<2x2xf32>
      %513 = arith.addf %492, %498 : vector<2x2xf32>
      %514 = arith.addf %504, %510 : vector<2x2xf32>
      %515 = arith.addf %511, %512 : vector<2x2xf32>
      %516 = arith.addf %513, %514 : vector<2x2xf32>
      %517 = arith.addf %515, %516 : vector<2x2xf32>
      %518 = arith.addf %462, %517 : vector<2x2xf32>
      %c0_56 = arith.constant 0 : index
      %c0_57 = arith.constant 0 : index
      %519 = vector.load %arg6[%c0_56, %c0_57] : memref<2x2xf32, #tpu.memory_space<vmem>>, vector<2x2xf32>
      tpu.vector_store %arg6[%c0_56, %c0_57], %518 {strides = array<i32>} : memref<2x2xf32, #tpu.memory_space<vmem>>, vector<2x2xf32>,
    } else {
    }
    return
  }
  func.func @transform_0(%arg0: i32, %arg1: i32) -> (i32, i32, i32) {
    %c0_i32 = arith.constant 0 : i32
    %c0_i32_0 = arith.constant 0 : i32
    return %arg1, %arg0, %c0_i32 : i32, i32, i32
  }
  func.func @transform_1(%arg0: i32, %arg1: i32) -> (i32, i32) {
    %c0_i32 = arith.constant 0 : i32
    %c0_i32_0 = arith.constant 0 : i32
    %c0_i32_1 = arith.constant 0 : i32
    return %c0_i32, %c0_i32_0 : i32, i32
  }
  func.func @transform_2(%arg0: i32, %arg1: i32) -> (i32, i32) {
    %c0_i32 = arith.constant 0 : i32
    %c0_i32_0 = arith.constant 0 : i32
    %c0_i32_1 = arith.constant 0 : i32
    return %c0_i32, %c0_i32_0 : i32, i32
  }
  func.func @transform_3(%arg0: i32, %arg1: i32) -> (i32, i32) {
    %c0_i32 = arith.constant 0 : i32
    %c0_i32_0 = arith.constant 0 : i32
    %c0_i32_1 = arith.constant 0 : i32
    return %c0_i32, %c0_i32_0 : i32, i32
  }
  func.func @transform_4(%arg0: i32, %arg1: i32) -> (i32, i32) {
    %c0_i32 = arith.constant 0 : i32
    %c0_i32_0 = arith.constant 0 : i32
    return %arg0, %c0_i32 : i32, i32
  }
}

</mosaic_0001>

<bundles_post_ra>
// kernel: tpu_custom_call.1
= control target key start
LH: loop header
LB: loop body
LE: loop exit
PB: predicated region body
PF: predicated region fallthrough
CT: control target
= control target key end

     0   :  { %9 = vsyncpa [#allocation5], 0  ;;  %s1318_s0 = inlined_call_operand.hbm [shape: f32[8,2,32], index: 0, kind: input, shape index: {}]   ;;  %s1319_s1 = inlined_call_operand.vmem [shape: f32[8,32], index: 1, kind: input, shape index: {}]   ;;  %s1320_s2 = inlined_call_operand.vmem [shape: f32[8,2], index: 2, kind: input, shape index: {}]   ;;  %s1321_s3 = inlined_call_operand.vmem [shape: f32[1,2], index: 3, kind: input, shape index: {}]   ;;  %s1322_s4 = inlined_call_operand.hbm [shape: f32[2,2], index: 4, kind: output, shape index: {}]  }
   0x1   :  { %10 = vsyncpa [#allocation6], 0  ;;  %s1015_s15 = smov [#allocation4]   ;;  %s967_s19 = scalar_lea.hbm %s1318_s0, 256 }
   0x2   :  { %s16_s16 = sshll.u32 %s1015_s15, 4  ;;  %p968_p0 = scmp.ne.s32.totalorder %s1318_s0, %s967_s19  ;;  %s17_s16 = int_to_ptr.vmem [resolvable:$true] %s16_s16 }
   0x3   :  { %p971_p1 = scmp.lt.u32.totalorder %s967_s19, %s1318_s0 }
   0x5   :  { %p973_p2 = pnand %p971_p1, %p968_p0 }
   0x7   :  { %976 = shalt.err (!%p973_p2)
}
   0x8   :  { %s977_s24 = scalar_lea.vmem %s17_s16, 256  ;;  %p982_p4 = scmp.lt.s32.totalorder %s17_s16, %s17_s16 }
   0x9   :  { %p978_p3 = scmp.ne.s32.totalorder %s17_s16, %s977_s24  ;;  %p983_p5 = scmp.lt.s32.totalorder %s977_s24, %s977_s24 }
   0xb   :  { %p984_p6 = por %p983_p5, %p982_p4 }
   0xd   :  { %p985_p7 = pnand %p984_p6, %p978_p3 }
   0xf   :  { %988 = shalt.err (!%p985_p7)
}
  0x10   :  { %s1016_s25 = smov 32   ;;  %s1017_s26 = smov 2  }
  0x11   :  { %22 = dma.hbm_to_vmem [thread:$0]  %s1318_s0, 256, %s17_s16, [#allocation5], %s1016_s25, %s1016_s25, %s1017_s26  }
  0x12   :  { %1011 = dma.done.wait [#allocation5], 256  }
  0x13   :  { %1012 = vsyncadd [#allocation5], 4294967040  ;;  %vm36_vm0 = vcmask 58368   ;;  %v1018_v0 = vmov 2   ;;  %v1019_v1 = vmov 0   ;;  %v1020_v2 = vmov 0.0  }
  0x14   :  { %848 = vset.pattern.permute.xlu1 %v1018_v0  ;;  %846 = vset.pattern.permute.xlu0 %v1019_v1  ;;  %37 = vst.msk [vmem:[#allocation2] sm:$0x3] %vm36_vm0, %v1020_v2  ;;  %38 = vst.msk [vmem:[#allocation3] sm:$0x3] %vm36_vm0, %v1020_v2  ;;  %v1021_v4 = vmov 3   ;;  %v1022_v5 = vmov 1   ;;  %v40_v12 = vlaneseq }
  0x15   :  { %v1023_v6 = vmov 4   ;;  %v1024_v7 = vmov 5   ;;  %v1025_v8 = vmov 6   ;;  %v1026_v9 = vmov 7   ;;  %s1027_s0 = smov 8   ;;  %v39_v24 = vld [vmem:[%s1319_s1] sm:$0xff] }
  0x16   :  { %v1080_v15 = vshrl.u32 %v40_v12, 7  ;;  %v74_v52 = vld [vmem:[#allocation4] sm:$0x3]  ;;  %s1028_s1 = smov 104   ;;  %v1035_v12 = vmov 21   ;;  %s1037_s5 = smov 120  }
  0x17   :  { %s1038_s6 = smov 112   ;;  %s1039_s10 = smov [#allocation7]   ;;  %vm787_vm1 = vcmask 9216  }
  0x18   :  { %v42_v16 = vsub.s32 0, %v1080_v15  ;;  %v54_v17 = vsub.s32 3, %v1080_v15  ;;  %v46_v18 = vsub.s32 1, %v1080_v15  ;;  %v50_v21 = vsub.s32 2, %v1080_v15  ;;  %s795_s11 = sshll.u32 %s1039_s10, 4  ;;  %s796_s11 = int_to_ptr.vmem [resolvable:$true] %s795_s11 }
  0x19   :  { %v58_v22 = vsub.s32 4, %v1080_v15  ;;  %v62_v23 = vsub.s32 5, %v1080_v15  ;;  %v66_v25 = vsub.s32 6, %v1080_v15  ;;  %v70_v29 = vsub.s32 7, %v1080_v15  ;;  %v820_v15 = vld [vmem:[%s1321_s3] ss:$0 sm:$0xff]  ;;  %p994_p9 = scmp.lt.s32.totalorder %s796_s11, %s796_s11 }
  0x1a   :  { %v1094_v26 = vrot.slane %v39_v24, %v42_v16  ;;  %v1098_v27 = vrot.slane %v39_v24, %v54_v17  ;;  %v1102_v28 = vrot.slane %v39_v24, %v46_v18  ;;  %v1107_v30 = vrot.slane %v39_v24, %v50_v21  ;;  %s989_s12 = scalar_lea.vmem %s796_s11, 32 }
  0x1b   :  { %v72_v3 = vld [vmem:[#allocation2] sm:$0x3]  ;;  %v73_v10 = vld [vmem:[#allocation3] sm:$0x3]  ;;  %v1111_v31 = vrot.slane %v39_v24, %v58_v22  ;;  %v1115_v32 = vrot.slane %v39_v24, %v62_v23  ;;  %v1119_v35 = vrot.slane %v39_v24, %v66_v25  ;;  %v1126_v39 = vrot.slane %v39_v24, %v70_v29  ;;  %p990_p8 = scmp.ne.s32.totalorder %s796_s11, %s989_s12  ;;  %p995_p10 = scmp.lt.s32.totalorder %s989_s12, %s989_s12 }
  0x1c   :  { %87 = vperm.xlu1 %848, %v72_v3   ;;  %77 = vperm.xlu0 %846, %v72_v3  }
  0x1d   :  { %p996_p11 = por %p995_p10, %p994_p9 }
  0x1f   :  { %p997_p12 = pnand %p996_p11, %p990_p8 }
  0x20   :  { %849 = vset.pattern.permute.xlu1 %v1021_v4  ;;  %847 = vset.pattern.permute.xlu0 %v1022_v5  ;;  %v1030_v4 = vmov 16  }
  0x21   :  { %92 = vperm.xlu1 %849, %v72_v3   ;;  %82 = vperm.xlu0 %847, %v72_v3  }
  0x25   :  { %850 = vset.pattern.permute.xlu1 %v1023_v6  ;;  %851 = vset.pattern.permute.xlu0 %v1024_v7 }
  0x26   :  { %97 = vperm.xlu1 %850, %v72_v3   ;;  %102 = vperm.xlu0 %851, %v72_v3  }
  0x2a   :  { %852 = vset.pattern.permute.xlu1 %v1025_v8  ;;  %854 = vset.pattern.permute.xlu0 %v1030_v4  ;;  %v1031_v8 = vmov 18  }
  0x2b   :  { %107 = vperm.xlu1 %852, %v72_v3  }
  0x2f   :  { %853 = vset.pattern.permute.xlu1 %v1026_v9  ;;  %v1032_v9 = vmov 19  }
  0x30   :  { %112 = vperm.xlu1 %853, %v72_v3   ;;  %v1029_v3 = vmov 17  }
  0x34   :  { %133 = vrot.lane.b32.xlu1 %v73_v10, %s1027_s0  ;;  %v1033_v10 = vmov 20  }
  0x35   :  { %855 = vset.pattern.permute.xlu1 %v1029_v3 }
  0x9b   :  { %v88_v11 = vpop.permute.xlu1 %87  ;;  %v78_v13 = vpop.permute.xlu0 %77 }
  0x9c   :  { %v80_v36 = vmul.f32 %v78_v13, %v1094_v26  ;;  %v90_v40 = vmul.f32 %v88_v11, %v1107_v30  ;;  %v1034_v11 = vmov 22   ;;  %v1036_v13 = vmov 23  }
  0xa0   :  { %v93_v14 = vpop.permute.xlu1 %92  ;;  %v83_v19 = vpop.permute.xlu0 %82 }
  0xa1   :  { %v95_v37 = vmul.f32 %v93_v14, %v1098_v27  ;;  %v85_v38 = vmul.f32 %v83_v19, %v1102_v28 }
  0xa3   :  { %v117_v44 = vadd.f32 %v95_v37, %v90_v40  ;;  %v116_v45 = vadd.f32 %v85_v38, %v80_v36 }
  0xa5   :  { %v98_v20 = vpop.permute.xlu1 %97  ;;  %v103_v34 = vpop.permute.xlu0 %102  ;;  %v120_v50 = vadd.f32 %v117_v44, %v116_v45 }
  0xa6   :  { %v100_v41 = vmul.f32 %v98_v20, %v1111_v31  ;;  %v105_v42 = vmul.f32 %v103_v34, %v1115_v32 }
  0xa8   :  { %v118_v48 = vadd.f32 %v105_v42, %v100_v41 }
  0xaa   :  { %v108_v33 = vpop.permute.xlu1 %107 }
  0xab   :  { %v110_v46 = vmul.f32 %v108_v33, %v1119_v35 }
  0xaf   :  { %v113_v43 = vpop.permute.xlu1 %112 }
  0xb0   :  { %v115_v47 = vmul.f32 %v113_v43, %v1126_v39 }
  0xb2   :  { %v119_v49 = vadd.f32 %v115_v47, %v110_v46 }
  0xb3   :  { %v134_v63 = vpop.permute.xlu1 %133 }
  0xb4   :  { %v121_v51 = vadd.f32 %v119_v49, %v118_v48 }
  0xb6   :  { %v122_v53 = vadd.f32 %v121_v51, %v120_v50 }
  0xb8   :  { %v123_v54 = vadd.f32 %v122_v53, %v74_v52  ;;  %v154_v53 = vld [vmem:[#allocation4 + $0x2] sm:$0x3] }
  0xba   :  { %v804_v55 = vmul.f32 -1.442695, %v123_v54 }
  0xbc   :  { %919 = vpow2.f32 %v804_v55 }
  0xc6   :  { %v920_v56 = vpop.eup %919 }
  0xc7   :  { %v127_v57 = vadd.f32 1.0, %v920_v56 }
  0xc9   :  { %921 = vrcp.f32 %v127_v57 }
  0xd3   :  { %v922_v58 = vpop.eup %921 }
  0xd4   :  { %v130_v59 = vmul.f32 2.0, %v922_v58  ;;  %v136_v0 = vmul.f32 %v922_v58, %v134_v63 }
  0xd6   :  { %v805_v60 = vadd.f32 -1.0, %v130_v59 }
  0xd8   :  { %138 = vrot.lane.b32.xlu0 %v805_v60, %s1028_s1 }
 0x14a   :  { %v139_v61 = vpop.permute.xlu0 %138 }
 0x14b   :  { %v141_v62 = vmul.f32 %v922_v58, %v139_v61 }
 0x14d   :  { %143 = vrot.lane.b32.xlu0 %v141_v62, %s1027_s0 }
 0x1bf   :  { %v144_v1 = vpop.permute.xlu0 %143 }
 0x1c0   :  { %v1135_v2 = vadd.f32 %v144_v1, %v136_v0 }
 0x1c2   :  { %923 = vtanh.f32 %v1135_v2 }
 0x1cc   :  { %v924_v5 = vpop.eup %923 }
 0x1cd   :  { %149 = vrot.lane.b32.xlu1 %v924_v5, %s1027_s0 }
 0x23f   :  { %v150_v6 = vpop.permute.xlu1 %149 }
 0x240   :  { %v152_v7 = vmul.f32 %v922_v58, %v150_v6 }
 0x242   :  { %162 = vperm.xlu1 %855, %v152_v7   ;;  %157 = vperm.xlu0 %854, %v152_v7  }
 0x246   :  { %856 = vset.pattern.permute.xlu1 %v1031_v8  ;;  %857 = vset.pattern.permute.xlu0 %v1032_v9 }
 0x247   :  { %167 = vperm.xlu1 %856, %v152_v7   ;;  %172 = vperm.xlu0 %857, %v152_v7  }
 0x24b   :  { %858 = vset.pattern.permute.xlu1 %v1033_v10  ;;  %860 = vset.pattern.permute.xlu0 %v1034_v11 }
 0x24c   :  { %177 = vperm.xlu1 %858, %v152_v7   ;;  %187 = vperm.xlu0 %860, %v152_v7  }
 0x250   :  { %859 = vset.pattern.permute.xlu1 %v1035_v12  ;;  %862 = vset.pattern.permute.xlu0 %v1030_v4 }
 0x251   :  { %182 = vperm.xlu1 %859, %v152_v7  }
 0x255   :  { %861 = vset.pattern.permute.xlu1 %v1036_v13 }
 0x256   :  { %192 = vperm.xlu1 %861, %v152_v7  }
 0x25a   :  { %863 = vset.pattern.permute.xlu1 %v1029_v3 }
 0x2c1   :  { %v163_v14 = vpop.permute.xlu1 %162  ;;  %v158_v20 = vpop.permute.xlu0 %157 }
 0x2c2   :  { %v165_v40 = vmul.f32 %v163_v14, %v1102_v28  ;;  %v160_v41 = vmul.f32 %v158_v20, %v1094_v26 }
 0x2c4   :  { %v196_v48 = vadd.f32 %v165_v40, %v160_v41 }
 0x2c6   :  { %v168_v19 = vpop.permute.xlu1 %167  ;;  %v173_v33 = vpop.permute.xlu0 %172 }
 0x2c7   :  { %v170_v36 = vmul.f32 %v168_v19, %v1107_v30  ;;  %v175_v37 = vmul.f32 %v173_v33, %v1098_v27 }
 0x2c9   :  { %v197_v44 = vadd.f32 %v175_v37, %v170_v36 }
 0x2cb   :  { %v178_v24 = vpop.permute.xlu1 %177  ;;  %v188_v38 = vpop.permute.xlu0 %187  ;;  %v200_v51 = vadd.f32 %v197_v44, %v196_v48 }
 0x2cc   :  { %v180_v45 = vmul.f32 %v178_v24, %v1111_v31  ;;  %v190_v46 = vmul.f32 %v188_v38, %v1119_v35 }
 0x2d0   :  { %v183_v34 = vpop.permute.xlu1 %182 }
 0x2d1   :  { %v185_v42 = vmul.f32 %v183_v34, %v1115_v32 }
 0x2d3   :  { %v198_v49 = vadd.f32 %v185_v42, %v180_v45 }
 0x2d5   :  { %v193_v43 = vpop.permute.xlu1 %192 }
 0x2d6   :  { %v195_v47 = vmul.f32 %v193_v43, %v1126_v39 }
 0x2d8   :  { %v199_v50 = vadd.f32 %v195_v47, %v190_v46 }
 0x2da   :  { %v201_v52 = vadd.f32 %v199_v50, %v198_v49 }
 0x2dc   :  { %v202_v54 = vadd.f32 %v201_v52, %v200_v51 }
 0x2de   :  { %v203_v55 = vadd.f32 %v202_v54, %v154_v53  ;;  %v230_v53 = vld [vmem:[#allocation4 + $0x4] sm:$0x3] }
 0x2e0   :  { %v806_v56 = vmul.f32 -1.442695, %v203_v55 }
 0x2e2   :  { %925 = vpow2.f32 %v806_v56 }
 0x2ec   :  { %v926_v57 = vpop.eup %925 }
 0x2ed   :  { %v207_v58 = vadd.f32 1.0, %v926_v57 }
 0x2ef   :  { %927 = vrcp.f32 %v207_v58 }
 0x2f9   :  { %v928_v59 = vpop.eup %927 }
 0x2fa   :  { %v210_v60 = vmul.f32 2.0, %v928_v59  ;;  %v212_v0 = vmul.f32 %v928_v59, %v1135_v2 }
 0x2fc   :  { %v807_v61 = vadd.f32 -1.0, %v210_v60 }
 0x2fe   :  { %214 = vrot.lane.b32.xlu1 %v807_v61, %s1028_s1 }
 0x370   :  { %v215_v62 = vpop.permute.xlu1 %214 }
 0x371   :  { %v217_v63 = vmul.f32 %v928_v59, %v215_v62 }
 0x373   :  { %219 = vrot.lane.b32.xlu0 %v217_v63, %s1027_s0 }
 0x3e5   :  { %v220_v1 = vpop.permute.xlu0 %219 }
 0x3e6   :  { %v222_v5 = vadd.f32 %v220_v1, %v212_v0 }
 0x3e8   :  { %929 = vtanh.f32 %v222_v5 }
 0x3f2   :  { %v930_v6 = vpop.eup %929 }
 0x3f3   :  { %225 = vrot.lane.b32.xlu1 %v930_v6, %s1027_s0 }
 0x465   :  { %v226_v7 = vpop.permute.xlu1 %225 }
 0x466   :  { %v228_v14 = vmul.f32 %v928_v59, %v226_v7 }
 0x468   :  { %238 = vperm.xlu1 %863, %v228_v14   ;;  %233 = vperm.xlu0 %862, %v228_v14  }
 0x46c   :  { %864 = vset.pattern.permute.xlu1 %v1031_v8  ;;  %865 = vset.pattern.permute.xlu0 %v1032_v9 }
 0x46d   :  { %243 = vperm.xlu1 %864, %v228_v14   ;;  %248 = vperm.xlu0 %865, %v228_v14  }
 0x471   :  { %866 = vset.pattern.permute.xlu1 %v1033_v10  ;;  %868 = vset.pattern.permute.xlu0 %v1034_v11 }
 0x472   :  { %253 = vperm.xlu1 %866, %v228_v14   ;;  %263 = vperm.xlu0 %868, %v228_v14  }
 0x476   :  { %867 = vset.pattern.permute.xlu1 %v1035_v12  ;;  %870 = vset.pattern.permute.xlu0 %v1030_v4 }
 0x477   :  { %258 = vperm.xlu1 %867, %v228_v14  }
 0x47b   :  { %869 = vset.pattern.permute.xlu1 %v1036_v13 }
 0x47c   :  { %268 = vperm.xlu1 %869, %v228_v14  }
 0x480   :  { %871 = vset.pattern.permute.xlu1 %v1029_v3 }
 0x4e7   :  { %v239_v2 = vpop.permute.xlu1 %238  ;;  %v234_v20 = vpop.permute.xlu0 %233 }
 0x4e8   :  { %v241_v40 = vmul.f32 %v239_v2, %v1102_v28  ;;  %v236_v41 = vmul.f32 %v234_v20, %v1094_v26 }
 0x4ea   :  { %v272_v48 = vadd.f32 %v241_v40, %v236_v41 }
 0x4ec   :  { %v244_v19 = vpop.permute.xlu1 %243  ;;  %v249_v33 = vpop.permute.xlu0 %248 }
 0x4ed   :  { %v246_v36 = vmul.f32 %v244_v19, %v1107_v30  ;;  %v251_v37 = vmul.f32 %v249_v33, %v1098_v27 }
 0x4ef   :  { %v273_v44 = vadd.f32 %v251_v37, %v246_v36 }
 0x4f1   :  { %v254_v24 = vpop.permute.xlu1 %253  ;;  %v264_v38 = vpop.permute.xlu0 %263  ;;  %v276_v51 = vadd.f32 %v273_v44, %v272_v48 }
 0x4f2   :  { %v256_v45 = vmul.f32 %v254_v24, %v1111_v31  ;;  %v266_v46 = vmul.f32 %v264_v38, %v1119_v35 }
 0x4f6   :  { %v259_v34 = vpop.permute.xlu1 %258 }
 0x4f7   :  { %v261_v42 = vmul.f32 %v259_v34, %v1115_v32 }
 0x4f9   :  { %v274_v49 = vadd.f32 %v261_v42, %v256_v45 }
 0x4fb   :  { %v269_v43 = vpop.permute.xlu1 %268 }
 0x4fc   :  { %v271_v47 = vmul.f32 %v269_v43, %v1126_v39 }
 0x4fe   :  { %v275_v50 = vadd.f32 %v271_v47, %v266_v46 }
 0x500   :  { %v277_v52 = vadd.f32 %v275_v50, %v274_v49 }
 0x502   :  { %v278_v54 = vadd.f32 %v277_v52, %v276_v51 }
 0x504   :  { %v279_v55 = vadd.f32 %v278_v54, %v230_v53  ;;  %v306_v53 = vld [vmem:[#allocation4 + $0x6] sm:$0x3] }
 0x506   :  { %v808_v56 = vmul.f32 -1.442695, %v279_v55 }
 0x508   :  { %931 = vpow2.f32 %v808_v56 }
 0x512   :  { %v932_v57 = vpop.eup %931 }
 0x513   :  { %v283_v58 = vadd.f32 1.0, %v932_v57 }
 0x515   :  { %933 = vrcp.f32 %v283_v58 }
 0x51f   :  { %v934_v59 = vpop.eup %933 }
 0x520   :  { %v286_v60 = vmul.f32 2.0, %v934_v59  ;;  %v288_v0 = vmul.f32 %v934_v59, %v222_v5 }
 0x522   :  { %v809_v61 = vadd.f32 -1.0, %v286_v60 }
 0x524   :  { %290 = vrot.lane.b32.xlu1 %v809_v61, %s1028_s1 }
 0x596   :  { %v291_v62 = vpop.permute.xlu1 %290 }
 0x597   :  { %v293_v63 = vmul.f32 %v934_v59, %v291_v62 }
 0x599   :  { %295 = vrot.lane.b32.xlu0 %v293_v63, %s1027_s0 }
 0x60b   :  { %v296_v1 = vpop.permute.xlu0 %295 }
 0x60c   :  { %v298_v6 = vadd.f32 %v296_v1, %v288_v0 }
 0x60e   :  { %935 = vtanh.f32 %v298_v6 }
 0x618   :  { %v936_v7 = vpop.eup %935 }
 0x619   :  { %301 = vrot.lane.b32.xlu1 %v936_v7, %s1027_s0 }
 0x68b   :  { %v302_v14 = vpop.permute.xlu1 %301 }
 0x68c   :  { %v304_v2 = vmul.f32 %v934_v59, %v302_v14 }
 0x68e   :  { %314 = vperm.xlu1 %871, %v304_v2   ;;  %309 = vperm.xlu0 %870, %v304_v2  }
 0x692   :  { %872 = vset.pattern.permute.xlu1 %v1031_v8  ;;  %873 = vset.pattern.permute.xlu0 %v1032_v9 }
 0x693   :  { %319 = vperm.xlu1 %872, %v304_v2   ;;  %324 = vperm.xlu0 %873, %v304_v2  }
 0x697   :  { %874 = vset.pattern.permute.xlu1 %v1033_v10  ;;  %876 = vset.pattern.permute.xlu0 %v1034_v11 }
 0x698   :  { %329 = vperm.xlu1 %874, %v304_v2   ;;  %339 = vperm.xlu0 %876, %v304_v2  }
 0x69c   :  { %875 = vset.pattern.permute.xlu1 %v1035_v12  ;;  %878 = vset.pattern.permute.xlu0 %v1030_v4 }
 0x69d   :  { %334 = vperm.xlu1 %875, %v304_v2  }
 0x6a1   :  { %877 = vset.pattern.permute.xlu1 %v1036_v13 }
 0x6a2   :  { %344 = vperm.xlu1 %877, %v304_v2  }
 0x6a6   :  { %879 = vset.pattern.permute.xlu1 %v1029_v3 }
 0x70d   :  { %v315_v5 = vpop.permute.xlu1 %314  ;;  %v310_v20 = vpop.permute.xlu0 %309 }
 0x70e   :  { %v317_v40 = vmul.f32 %v315_v5, %v1102_v28  ;;  %v312_v41 = vmul.f32 %v310_v20, %v1094_v26 }
 0x710   :  { %v348_v48 = vadd.f32 %v317_v40, %v312_v41 }
 0x712   :  { %v320_v19 = vpop.permute.xlu1 %319  ;;  %v325_v33 = vpop.permute.xlu0 %324 }
 0x713   :  { %v322_v36 = vmul.f32 %v320_v19, %v1107_v30  ;;  %v327_v37 = vmul.f32 %v325_v33, %v1098_v27 }
 0x715   :  { %v349_v44 = vadd.f32 %v327_v37, %v322_v36 }
 0x717   :  { %v330_v24 = vpop.permute.xlu1 %329  ;;  %v340_v38 = vpop.permute.xlu0 %339  ;;  %v352_v51 = vadd.f32 %v349_v44, %v348_v48 }
 0x718   :  { %v332_v45 = vmul.f32 %v330_v24, %v1111_v31  ;;  %v342_v46 = vmul.f32 %v340_v38, %v1119_v35 }
 0x71c   :  { %v335_v34 = vpop.permute.xlu1 %334 }
 0x71d   :  { %v337_v42 = vmul.f32 %v335_v34, %v1115_v32 }
 0x71f   :  { %v350_v49 = vadd.f32 %v337_v42, %v332_v45 }
 0x721   :  { %v345_v43 = vpop.permute.xlu1 %344 }
 0x722   :  { %v347_v47 = vmul.f32 %v345_v43, %v1126_v39 }
 0x724   :  { %v351_v50 = vadd.f32 %v347_v47, %v342_v46 }
 0x726   :  { %v353_v52 = vadd.f32 %v351_v50, %v350_v49 }
 0x728   :  { %v354_v54 = vadd.f32 %v353_v52, %v352_v51 }
 0x72a   :  { %v355_v55 = vadd.f32 %v354_v54, %v306_v53  ;;  %v382_v53 = vld [vmem:[#allocation4 + $0x8] sm:$0x3] }
 0x72c   :  { %v810_v56 = vmul.f32 -1.442695, %v355_v55 }
 0x72e   :  { %937 = vpow2.f32 %v810_v56 }
 0x738   :  { %v938_v57 = vpop.eup %937 }
 0x739   :  { %v359_v58 = vadd.f32 1.0, %v938_v57 }
 0x73b   :  { %939 = vrcp.f32 %v359_v58 }
 0x745   :  { %v940_v59 = vpop.eup %939 }
 0x746   :  { %v362_v60 = vmul.f32 2.0, %v940_v59  ;;  %v364_v0 = vmul.f32 %v940_v59, %v298_v6 }
 0x748   :  { %v811_v61 = vadd.f32 -1.0, %v362_v60 }
 0x74a   :  { %366 = vrot.lane.b32.xlu1 %v811_v61, %s1028_s1 }
 0x7bc   :  { %v367_v62 = vpop.permute.xlu1 %366 }
 0x7bd   :  { %v369_v63 = vmul.f32 %v940_v59, %v367_v62 }
 0x7bf   :  { %371 = vrot.lane.b32.xlu0 %v369_v63, %s1027_s0 }
 0x831   :  { %v372_v1 = vpop.permute.xlu0 %371 }
 0x832   :  { %v374_v7 = vadd.f32 %v372_v1, %v364_v0 }
 0x834   :  { %941 = vtanh.f32 %v374_v7 }
 0x83e   :  { %v942_v14 = vpop.eup %941 }
 0x83f   :  { %377 = vrot.lane.b32.xlu1 %v942_v14, %s1027_s0 }
 0x8b1   :  { %v378_v2 = vpop.permute.xlu1 %377 }
 0x8b2   :  { %v380_v5 = vmul.f32 %v940_v59, %v378_v2 }
 0x8b4   :  { %390 = vperm.xlu1 %879, %v380_v5   ;;  %385 = vperm.xlu0 %878, %v380_v5  }
 0x8b8   :  { %880 = vset.pattern.permute.xlu1 %v1031_v8  ;;  %881 = vset.pattern.permute.xlu0 %v1032_v9 }
 0x8b9   :  { %395 = vperm.xlu1 %880, %v380_v5   ;;  %400 = vperm.xlu0 %881, %v380_v5  }
 0x8bd   :  { %882 = vset.pattern.permute.xlu1 %v1033_v10  ;;  %884 = vset.pattern.permute.xlu0 %v1034_v11 }
 0x8be   :  { %405 = vperm.xlu1 %882, %v380_v5   ;;  %415 = vperm.xlu0 %884, %v380_v5  }
 0x8c2   :  { %883 = vset.pattern.permute.xlu1 %v1035_v12  ;;  %886 = vset.pattern.permute.xlu0 %v1030_v4 }
 0x8c3   :  { %410 = vperm.xlu1 %883, %v380_v5  }
 0x8c7   :  { %885 = vset.pattern.permute.xlu1 %v1036_v13 }
 0x8c8   :  { %420 = vperm.xlu1 %885, %v380_v5  }
 0x8cc   :  { %887 = vset.pattern.permute.xlu1 %v1029_v3 }
 0x933   :  { %v391_v6 = vpop.permute.xlu1 %390  ;;  %v386_v20 = vpop.permute.xlu0 %385 }
 0x934   :  { %v393_v40 = vmul.f32 %v391_v6, %v1102_v28  ;;  %v388_v41 = vmul.f32 %v386_v20, %v1094_v26 }
 0x936   :  { %v424_v48 = vadd.f32 %v393_v40, %v388_v41 }
 0x938   :  { %v396_v19 = vpop.permute.xlu1 %395  ;;  %v401_v33 = vpop.permute.xlu0 %400 }
 0x939   :  { %v398_v36 = vmul.f32 %v396_v19, %v1107_v30  ;;  %v403_v37 = vmul.f32 %v401_v33, %v1098_v27 }
 0x93b   :  { %v425_v44 = vadd.f32 %v403_v37, %v398_v36 }
 0x93d   :  { %v406_v24 = vpop.permute.xlu1 %405  ;;  %v416_v38 = vpop.permute.xlu0 %415  ;;  %v428_v51 = vadd.f32 %v425_v44, %v424_v48 }
 0x93e   :  { %v408_v45 = vmul.f32 %v406_v24, %v1111_v31  ;;  %v418_v46 = vmul.f32 %v416_v38, %v1119_v35 }
 0x942   :  { %v411_v34 = vpop.permute.xlu1 %410 }
 0x943   :  { %v413_v42 = vmul.f32 %v411_v34, %v1115_v32 }
 0x945   :  { %v426_v49 = vadd.f32 %v413_v42, %v408_v45 }
 0x947   :  { %v421_v43 = vpop.permute.xlu1 %420 }
 0x948   :  { %v423_v47 = vmul.f32 %v421_v43, %v1126_v39 }
 0x94a   :  { %v427_v50 = vadd.f32 %v423_v47, %v418_v46 }
 0x94c   :  { %v429_v52 = vadd.f32 %v427_v50, %v426_v49 }
 0x94e   :  { %v430_v54 = vadd.f32 %v429_v52, %v428_v51 }
 0x950   :  { %v431_v55 = vadd.f32 %v430_v54, %v382_v53  ;;  %v458_v53 = vld [vmem:[#allocation4 + $0xa] sm:$0x3] }
 0x952   :  { %v812_v56 = vmul.f32 -1.442695, %v431_v55 }
 0x954   :  { %943 = vpow2.f32 %v812_v56 }
 0x95e   :  { %v944_v57 = vpop.eup %943 }
 0x95f   :  { %v435_v58 = vadd.f32 1.0, %v944_v57 }
 0x961   :  { %945 = vrcp.f32 %v435_v58 }
 0x96b   :  { %v946_v59 = vpop.eup %945 }
 0x96c   :  { %v438_v60 = vmul.f32 2.0, %v946_v59  ;;  %v440_v0 = vmul.f32 %v946_v59, %v374_v7 }
 0x96e   :  { %v813_v61 = vadd.f32 -1.0, %v438_v60 }
 0x970   :  { %442 = vrot.lane.b32.xlu1 %v813_v61, %s1028_s1 }
 0x9e2   :  { %v443_v62 = vpop.permute.xlu1 %442 }
 0x9e3   :  { %v445_v63 = vmul.f32 %v946_v59, %v443_v62 }
 0x9e5   :  { %447 = vrot.lane.b32.xlu0 %v445_v63, %s1027_s0 }
 0xa57   :  { %v448_v1 = vpop.permute.xlu0 %447 }
 0xa58   :  { %v450_v14 = vadd.f32 %v448_v1, %v440_v0 }
 0xa5a   :  { %947 = vtanh.f32 %v450_v14 }
 0xa64   :  { %v948_v2 = vpop.eup %947 }
 0xa65   :  { %453 = vrot.lane.b32.xlu1 %v948_v2, %s1027_s0 }
 0xad7   :  { %v454_v5 = vpop.permute.xlu1 %453 }
 0xad8   :  { %v456_v6 = vmul.f32 %v946_v59, %v454_v5 }
 0xada   :  { %466 = vperm.xlu1 %887, %v456_v6   ;;  %461 = vperm.xlu0 %886, %v456_v6  }
 0xade   :  { %888 = vset.pattern.permute.xlu1 %v1031_v8  ;;  %889 = vset.pattern.permute.xlu0 %v1032_v9 }
 0xadf   :  { %471 = vperm.xlu1 %888, %v456_v6   ;;  %476 = vperm.xlu0 %889, %v456_v6  }
 0xae3   :  { %890 = vset.pattern.permute.xlu1 %v1033_v10  ;;  %892 = vset.pattern.permute.xlu0 %v1034_v11 }
 0xae4   :  { %481 = vperm.xlu1 %890, %v456_v6   ;;  %491 = vperm.xlu0 %892, %v456_v6  }
 0xae8   :  { %891 = vset.pattern.permute.xlu1 %v1035_v12  ;;  %894 = vset.pattern.permute.xlu0 %v1030_v4 }
 0xae9   :  { %486 = vperm.xlu1 %891, %v456_v6  }
 0xaed   :  { %893 = vset.pattern.permute.xlu1 %v1036_v13 }
 0xaee   :  { %496 = vperm.xlu1 %893, %v456_v6  }
 0xaf2   :  { %895 = vset.pattern.permute.xlu1 %v1029_v3 }
 0xb59   :  { %v467_v7 = vpop.permute.xlu1 %466  ;;  %v462_v20 = vpop.permute.xlu0 %461 }
 0xb5a   :  { %v469_v40 = vmul.f32 %v467_v7, %v1102_v28  ;;  %v464_v41 = vmul.f32 %v462_v20, %v1094_v26 }
 0xb5c   :  { %v500_v48 = vadd.f32 %v469_v40, %v464_v41 }
 0xb5e   :  { %v472_v19 = vpop.permute.xlu1 %471  ;;  %v477_v33 = vpop.permute.xlu0 %476 }
 0xb5f   :  { %v474_v36 = vmul.f32 %v472_v19, %v1107_v30  ;;  %v479_v37 = vmul.f32 %v477_v33, %v1098_v27 }
 0xb61   :  { %v501_v44 = vadd.f32 %v479_v37, %v474_v36 }
 0xb63   :  { %v482_v24 = vpop.permute.xlu1 %481  ;;  %v492_v38 = vpop.permute.xlu0 %491  ;;  %v504_v51 = vadd.f32 %v501_v44, %v500_v48 }
 0xb64   :  { %v484_v45 = vmul.f32 %v482_v24, %v1111_v31  ;;  %v494_v46 = vmul.f32 %v492_v38, %v1119_v35 }
 0xb68   :  { %v487_v34 = vpop.permute.xlu1 %486 }
 0xb69   :  { %v489_v42 = vmul.f32 %v487_v34, %v1115_v32 }
 0xb6b   :  { %v502_v49 = vadd.f32 %v489_v42, %v484_v45 }
 0xb6d   :  { %v497_v43 = vpop.permute.xlu1 %496 }
 0xb6e   :  { %v499_v47 = vmul.f32 %v497_v43, %v1126_v39 }
 0xb70   :  { %v503_v50 = vadd.f32 %v499_v47, %v494_v46 }
 0xb72   :  { %v505_v52 = vadd.f32 %v503_v50, %v502_v49 }
 0xb74   :  { %v506_v54 = vadd.f32 %v505_v52, %v504_v51 }
 0xb76   :  { %v507_v55 = vadd.f32 %v506_v54, %v458_v53  ;;  %v534_v53 = vld [vmem:[#allocation4 + $0xc] sm:$0x3] }
 0xb78   :  { %v814_v56 = vmul.f32 -1.442695, %v507_v55 }
 0xb7a   :  { %949 = vpow2.f32 %v814_v56 }
 0xb84   :  { %v950_v57 = vpop.eup %949 }
 0xb85   :  { %v511_v58 = vadd.f32 1.0, %v950_v57 }
 0xb87   :  { %951 = vrcp.f32 %v511_v58 }
 0xb91   :  { %v952_v59 = vpop.eup %951 }
 0xb92   :  { %v514_v60 = vmul.f32 2.0, %v952_v59  ;;  %v516_v0 = vmul.f32 %v952_v59, %v450_v14 }
 0xb94   :  { %v815_v61 = vadd.f32 -1.0, %v514_v60 }
 0xb96   :  { %518 = vrot.lane.b32.xlu1 %v815_v61, %s1028_s1 }
 0xc08   :  { %v519_v62 = vpop.permute.xlu1 %518 }
 0xc09   :  { %v521_v63 = vmul.f32 %v952_v59, %v519_v62 }
 0xc0b   :  { %523 = vrot.lane.b32.xlu0 %v521_v63, %s1027_s0 }
 0xc7d   :  { %v524_v1 = vpop.permute.xlu0 %523 }
 0xc7e   :  { %v526_v2 = vadd.f32 %v524_v1, %v516_v0 }
 0xc80   :  { %953 = vtanh.f32 %v526_v2 }
 0xc8a   :  { %v954_v5 = vpop.eup %953 }
 0xc8b   :  { %529 = vrot.lane.b32.xlu1 %v954_v5, %s1027_s0 }
 0xcfd   :  { %v530_v6 = vpop.permute.xlu1 %529 }
 0xcfe   :  { %v532_v7 = vmul.f32 %v952_v59, %v530_v6 }
 0xd00   :  { %542 = vperm.xlu1 %895, %v532_v7   ;;  %537 = vperm.xlu0 %894, %v532_v7  }
 0xd04   :  { %896 = vset.pattern.permute.xlu1 %v1031_v8  ;;  %897 = vset.pattern.permute.xlu0 %v1032_v9 }
 0xd05   :  { %547 = vperm.xlu1 %896, %v532_v7   ;;  %552 = vperm.xlu0 %897, %v532_v7  }
 0xd09   :  { %898 = vset.pattern.permute.xlu1 %v1033_v10  ;;  %900 = vset.pattern.permute.xlu0 %v1034_v11 }
 0xd0a   :  { %557 = vperm.xlu1 %898, %v532_v7   ;;  %567 = vperm.xlu0 %900, %v532_v7  }
 0xd0e   :  { %899 = vset.pattern.permute.xlu1 %v1035_v12  ;;  %902 = vset.pattern.permute.xlu0 %v1030_v4 }
 0xd0f   :  { %562 = vperm.xlu1 %899, %v532_v7  }
 0xd13   :  { %901 = vset.pattern.permute.xlu1 %v1036_v13 }
 0xd14   :  { %572 = vperm.xlu1 %901, %v532_v7  }
 0xd18   :  { %903 = vset.pattern.permute.xlu1 %v1029_v3 }
 0xd7f   :  { %v543_v14 = vpop.permute.xlu1 %542  ;;  %v538_v20 = vpop.permute.xlu0 %537 }
 0xd80   :  { %v545_v40 = vmul.f32 %v543_v14, %v1102_v28  ;;  %v540_v41 = vmul.f32 %v538_v20, %v1094_v26 }
 0xd82   :  { %v576_v48 = vadd.f32 %v545_v40, %v540_v41 }
 0xd84   :  { %v548_v19 = vpop.permute.xlu1 %547  ;;  %v553_v33 = vpop.permute.xlu0 %552 }
 0xd85   :  { %v550_v36 = vmul.f32 %v548_v19, %v1107_v30  ;;  %v555_v37 = vmul.f32 %v553_v33, %v1098_v27 }
 0xd87   :  { %v577_v44 = vadd.f32 %v555_v37, %v550_v36 }
 0xd89   :  { %v558_v24 = vpop.permute.xlu1 %557  ;;  %v568_v38 = vpop.permute.xlu0 %567  ;;  %v580_v51 = vadd.f32 %v577_v44, %v576_v48 }
 0xd8a   :  { %v560_v45 = vmul.f32 %v558_v24, %v1111_v31  ;;  %v570_v46 = vmul.f32 %v568_v38, %v1119_v35 }
 0xd8e   :  { %v563_v34 = vpop.permute.xlu1 %562 }
 0xd8f   :  { %v565_v42 = vmul.f32 %v563_v34, %v1115_v32 }
 0xd91   :  { %v578_v49 = vadd.f32 %v565_v42, %v560_v45 }
 0xd93   :  { %v573_v43 = vpop.permute.xlu1 %572 }
 0xd94   :  { %v575_v47 = vmul.f32 %v573_v43, %v1126_v39 }
 0xd96   :  { %v579_v50 = vadd.f32 %v575_v47, %v570_v46 }
 0xd98   :  { %v581_v52 = vadd.f32 %v579_v50, %v578_v49  ;;  %v610_v49 = vld [vmem:[#allocation4 + $0xe] sm:$0x3] }
 0xd9a   :  { %v582_v54 = vadd.f32 %v581_v52, %v580_v51 }
 0xd9c   :  { %v583_v55 = vadd.f32 %v582_v54, %v534_v53 }
 0xd9e   :  { %v816_v56 = vmul.f32 -1.442695, %v583_v55 }
 0xda0   :  { %955 = vpow2.f32 %v816_v56 }
 0xdaa   :  { %v956_v57 = vpop.eup %955 }
 0xdab   :  { %v587_v58 = vadd.f32 1.0, %v956_v57 }
 0xdad   :  { %957 = vrcp.f32 %v587_v58 }
 0xdb7   :  { %v958_v59 = vpop.eup %957 }
 0xdb8   :  { %v590_v60 = vmul.f32 2.0, %v958_v59  ;;  %v592_v0 = vmul.f32 %v958_v59, %v526_v2 }
 0xdba   :  { %v817_v61 = vadd.f32 -1.0, %v590_v60 }
 0xdbc   :  { %594 = vrot.lane.b32.xlu1 %v817_v61, %s1028_s1 }
 0xe2e   :  { %v595_v62 = vpop.permute.xlu1 %594 }
 0xe2f   :  { %v597_v63 = vmul.f32 %v958_v59, %v595_v62 }
 0xe31   :  { %599 = vrot.lane.b32.xlu0 %v597_v63, %s1027_s0 }
 0xea3   :  { %v600_v1 = vpop.permute.xlu0 %599 }
 0xea4   :  { %v602_v5 = vadd.f32 %v600_v1, %v592_v0 }
 0xea6   :  { %959 = vtanh.f32 %v602_v5 }
 0xeb0   :  { %v960_v6 = vpop.eup %959 }
 0xeb1   :  { %605 = vrot.lane.b32.xlu1 %v960_v6, %s1027_s0 }
 0xf23   :  { %v606_v7 = vpop.permute.xlu1 %605 }
 0xf24   :  { %v608_v14 = vmul.f32 %v958_v59, %v606_v7 }
 0xf26   :  { %618 = vperm.xlu1 %903, %v608_v14   ;;  %613 = vperm.xlu0 %902, %v608_v14  }
 0xf2a   :  { %904 = vset.pattern.permute.xlu1 %v1031_v8  ;;  %905 = vset.pattern.permute.xlu0 %v1032_v9 }
 0xf2b   :  { %623 = vperm.xlu1 %904, %v608_v14   ;;  %628 = vperm.xlu0 %905, %v608_v14  }
 0xf2f   :  { %906 = vset.pattern.permute.xlu1 %v1033_v10  ;;  %908 = vset.pattern.permute.xlu0 %v1034_v11 }
 0xf30   :  { %633 = vperm.xlu1 %906, %v608_v14   ;;  %643 = vperm.xlu0 %908, %v608_v14  }
 0xf34   :  { %907 = vset.pattern.permute.xlu1 %v1035_v12  ;;  %910 = vset.pattern.permute.xlu0 %v1030_v4 }
 0xf35   :  { %638 = vperm.xlu1 %907, %v608_v14  }
 0xf39   :  { %909 = vset.pattern.permute.xlu1 %v1036_v13 }
 0xf3a   :  { %648 = vperm.xlu1 %909, %v608_v14  }
 0xf3e   :  { %911 = vset.pattern.permute.xlu1 %v1029_v3 }
 0xfa5   :  { %v619_v2 = vpop.permute.xlu1 %618  ;;  %v614_v20 = vpop.permute.xlu0 %613 }
 0xfa6   :  { %v621_v40 = vmul.f32 %v619_v2, %v1102_v28  ;;  %v616_v4 = vmul.f32 %v614_v20, %v1094_v26 }
 0xfa8   :  { %v652_v46 = vadd.f32 %v621_v40, %v616_v4 }
 0xfaa   :  { %v624_v19 = vpop.permute.xlu1 %623  ;;  %v629_v33 = vpop.permute.xlu0 %628 }
 0xfab   :  { %v626_v36 = vmul.f32 %v624_v19, %v1107_v30  ;;  %v631_v37 = vmul.f32 %v629_v33, %v1098_v27 }
 0xfad   :  { %v653_v43 = vadd.f32 %v631_v37, %v626_v36 }
 0xfaf   :  { %v634_v24 = vpop.permute.xlu1 %633  ;;  %v644_v38 = vpop.permute.xlu0 %643  ;;  %v656_v48 = vadd.f32 %v653_v43, %v652_v46 }
 0xfb0   :  { %v636_v3 = vmul.f32 %v634_v24, %v1111_v31  ;;  %v646_v44 = vmul.f32 %v644_v38, %v1119_v35 }
 0xfb4   :  { %v639_v34 = vpop.permute.xlu1 %638 }
 0xfb5   :  { %v641_v41 = vmul.f32 %v639_v34, %v1115_v32 }
 0xfb7   :  { %v654_v47 = vadd.f32 %v641_v41, %v636_v3 }
 0xfb9   :  { %v649_v42 = vpop.permute.xlu1 %648 }
 0xfba   :  { %v651_v45 = vmul.f32 %v649_v42, %v1126_v39 }
 0xfbc   :  { %v655_v30 = vadd.f32 %v651_v45, %v646_v44 }
 0xfbe   :  { %v657_v27 = vadd.f32 %v655_v30, %v654_v47 }
 0xfc0   :  { %v658_v50 = vadd.f32 %v657_v27, %v656_v48 }
 0xfc2   :  { %v659_v28 = vadd.f32 %v658_v50, %v610_v49 }
 0xfc4   :  { %v818_v51 = vmul.f32 -1.442695, %v659_v28 }
 0xfc6   :  { %961 = vpow2.f32 %v818_v51 }
 0xfd0   :  { %v962_v26 = vpop.eup %961 }
 0xfd1   :  { %v663_v32 = vadd.f32 1.0, %v962_v26 }
 0xfd3   :  { %963 = vrcp.f32 %v663_v32 }
 0xfdd   :  { %v964_v52 = vpop.eup %963 }
 0xfde   :  { %v666_v53 = vmul.f32 2.0, %v964_v52  ;;  %v668_v54 = vmul.f32 %v964_v52, %v602_v5 }
 0xfe0   :  { %v819_v31 = vadd.f32 -1.0, %v666_v53 }
 0xfe2   :  { %670 = vrot.lane.b32.xlu1 %v819_v31, %s1028_s1 }
0x1054   :  { %v671_v35 = vpop.permute.xlu1 %670 }
0x1055   :  { %v673_v39 = vmul.f32 %v964_v52, %v671_v35 }
0x1057   :  { %675 = vrot.lane.b32.xlu0 %v673_v39, %s1027_s0 }
0x10c9   :  { %v676_v55 = vpop.permute.xlu0 %675 }
0x10ca   :  { %v678_v56 = vadd.f32 %v676_v55, %v668_v54 }
0x10cc   :  { %965 = vtanh.f32 %v678_v56 }
0x10d6   :  { %v966_v57 = vpop.eup %965 }
0x10d7   :  { %681 = vrot.lane.b32.xlu1 %v966_v57, %s1027_s0 }
0x1149   :  { %v682_v58 = vpop.permute.xlu1 %681 }
0x114a   :  { %v684_v59 = vmul.f32 %v964_v52, %v682_v58 }
0x114c   :  { %721 = vperm.xlu1 %911, %v684_v59   ;;  %712 = vperm.xlu0 %910, %v684_v59  }
0x1150   :  { %912 = vset.pattern.permute.xlu1 %v1031_v8  ;;  %913 = vset.pattern.permute.xlu0 %v1032_v9 }
0x1151   :  { %730 = vperm.xlu1 %912, %v684_v59   ;;  %739 = vperm.xlu0 %913, %v684_v59  }
0x1155   :  { %914 = vset.pattern.permute.xlu1 %v1033_v10  ;;  %916 = vset.pattern.permute.xlu0 %v1034_v11 }
0x1156   :  { %748 = vperm.xlu1 %914, %v684_v59   ;;  %766 = vperm.xlu0 %916, %v684_v59  }
0x115a   :  { %915 = vset.pattern.permute.xlu1 %v1035_v12  ;;  %692 = vrot.lane.b32.xlu0 %v678_v56, %s1037_s5  ;;  %v699_v12 = vld [vmem:[%s1320_s2] sm:$0xff] }
0x115b   :  { %757 = vperm.xlu1 %915, %v684_v59   ;;  %918 = vset.pattern.permute.xlu0 %v1036_v13  ;;  %v728_v62 = vrot.slane %v699_v12, %v50_v21  ;;  %v737_v63 = vrot.slane %v699_v12, %v54_v17  ;;  %v719_v0 = vrot.slane %v699_v12, %v46_v18 }
0x115c   :  { %v710_v1 = vrot.slane %v699_v12, %v42_v16  ;;  %v755_v5 = vrot.slane %v699_v12, %v62_v23  ;;  %v746_v7 = vrot.slane %v699_v12, %v58_v22  ;;  %v764_v17 = vrot.slane %v699_v12, %v66_v25 }
0x115d   :  { %v773_v18 = vrot.slane %v699_v12, %v70_v29 }
0x115f   :  { %917 = vset.pattern.permute.xlu1 %v1036_v13 }
0x1160   :  { %775 = vperm.xlu1 %917, %v684_v59  }
0x1164   :  { %686 = vrot.lane.b32.xlu1 %v684_v59, %s1038_s6 }
0x11cb   :  { %v722_v8 = vpop.permute.xlu1 %721  ;;  %v713_v9 = vpop.permute.xlu0 %712 }
0x11cc   :  { %v724_v2 = vmul.f32 %v722_v8, %v719_v0  ;;  %v715_v19 = vmul.f32 %v713_v9, %v710_v1 }
0x11ce   :  { %v779_v36 = vadd.f32 %v724_v2, %v715_v19 }
0x11d0   :  { %v731_v60 = vpop.permute.xlu1 %730  ;;  %v740_v10 = vpop.permute.xlu0 %739 }
0x11d1   :  { %v733_v21 = vmul.f32 %v731_v60, %v728_v62  ;;  %v742_v14 = vmul.f32 %v740_v10, %v737_v63 }
0x11d3   :  { %v780_v24 = vadd.f32 %v742_v14, %v733_v21 }
0x11d5   :  { %v749_v61 = vpop.permute.xlu1 %748  ;;  %v767_v11 = vpop.permute.xlu0 %766  ;;  %v783_v40 = vadd.f32 %v780_v24, %v779_v36 }
0x11d6   :  { %v751_v33 = vmul.f32 %v749_v61, %v746_v7  ;;  %v769_v34 = vmul.f32 %v767_v11, %v764_v17 }
0x11d9   :  { %v693_v13 = vpop.permute.xlu0 %692 }
0x11da   :  { %695 = vst.msk [vmem:[#allocation3] sm:$0x3] %vm36_vm0, %v693_v13  ;;  %v758_v6 = vpop.permute.xlu1 %757 }
0x11db   :  { %v760_v16 = vmul.f32 %v758_v6, %v755_v5 }
0x11dd   :  { %v781_v37 = vadd.f32 %v760_v16, %v751_v33 }
0x11df   :  { %v776_v20 = vpop.permute.xlu1 %775 }
0x11e0   :  { %v778_v23 = vmul.f32 %v776_v20, %v773_v18 }
0x11e2   :  { %v782_v38 = vadd.f32 %v778_v23, %v769_v34 }
0x11e3   :  { %v687_v22 = vpop.permute.xlu1 %686 }
0x11e4   :  { %v784_v4 = vadd.f32 %v782_v38, %v781_v37  ;;  %690 = vst.msk [vmem:[#allocation2] sm:$0x3] %vm36_vm0, %v687_v22 }
0x11e6   :  { %v785_v25 = vadd.f32 %v784_v4, %v783_v40 }
0x11e8   :  { %v786_v29 = vadd.f32 %v820_v15, %v785_v25 }
0x11ea   :  { %788 = vst.msk [vmem:[#allocation7] sm:$0x3] %vm787_vm1, %v786_v29 }
0x11eb   :  { %1000 = shalt.err (!%p997_p12)
}
0x11ec   :  { %s1001_s15 = scalar_lea.hbm %s1322_s4, 32 }
0x11ed   :  { %p1002_p13 = scmp.ne.s32.totalorder %s1322_s4, %s1001_s15  ;;  %p1005_p0 = scmp.lt.u32.totalorder %s1001_s15, %s1322_s4 }
0x11ef   :  { %p1007_p1 = pnand %p1005_p0, %p1002_p13 }
0x11f1   :  { %1010 = shalt.err (!%p1007_p1)
}
0x11f2   :  { %798 = dma.vmem_to_hbm [thread:$0]  %s796_s11, 32, %s1322_s4, [#allocation6]  }
0x11f3   :  { %1013 = dma.done.wait [#allocation6], 32  }
0x11f4   :  { %1014 = vsyncadd [#allocation6], 4294967264 }
0x11f5   :  { %802 = vsyncpa [#allocation5], 1 }
0x11f6   :  { %803 = vsyncpa [#allocation6], 1 }

</bundles_post_ra>
